<compile_context>
chip_gen: v5e
topology: v5e:2x2
jax: 0.10.0
libtpu: 0.0.40
codegen_flags: <defaults>
</compile_context>

<pallas_src>
import jax
import jax.numpy as jnp
from jax.experimental import pallas as pl
from jax.experimental.pallas import tpu as pltpu

NUM_COLORS = 27
_COLOR_STEPS = (0.0, 127.0, 255.0)
LANES = 128
NCORES = 2      # leading "parallel" grid axis (2 TCs on v7x; cheap no-op elsewhere)
MAX_TM = 512    # sublane rows per tile -> 512*128 px, ~0.75 MiB f32 image block


def color_hist_kernel(img_ref, mask_ref, out_ref):
    # img_ref:  VMEM (3, TM, 128) f32  -- channel planes, sublane-dense pixel tile
    # mask_ref: VMEM (TM, 128)    f32
    # out_ref:  VMEM (27, 128)    f32  -- per-(bin, lane) partial counts (accumulator)
    @pl.when(pl.program_id(1) == 0)
    def _init():
        out_ref[...] = jnp.zeros_like(out_ref)

    r = img_ref[0]                      # (TM, 128)
    g = img_ref[1]
    b = img_ref[2]
    valid = mask_ref[...] > 0.5         # (TM, 128) bool

    # Separable L1 distance: 9 per-channel distances, 9 (r,g) partial sums.
    dr = [jnp.abs(r - s) for s in _COLOR_STEPS]
    dg = [jnp.abs(g - s) for s in _COLOR_STEPS]
    db = [jnp.abs(b - s) for s in _COLOR_STEPS]
    rg = [dr_i + dg_j for dr_i in dr for dg_j in dg]   # index 3*i + j

    # Color 0 initializes the running min (saves one compare/select pass).
    best_d = rg[0] + db[0]
    best_idx = jnp.zeros_like(best_d)
    for k in range(1, NUM_COLORS):
        i, rem = divmod(k, 9)
        j, l = divmod(rem, 3)
        d = rg[3 * i + j] + db[l]
        better = d < best_d             # strict '<' => first-minimum tie-break
        best_idx = jnp.where(better, jnp.float32(k), best_idx)
        best_d = jnp.where(better, d, best_d)

    # Histogram: mask folded into the compare; per-lane partial counts per bin
    # accumulated into the lane-dense (27, 128) output block across grid steps.
    for k in range(NUM_COLORS):
        m = jnp.where((best_idx == jnp.float32(k)) & valid, 1.0, 0.0)
        out_ref[k:k + 1, :] = out_ref[k:k + 1, :] + jnp.sum(m, axis=0, keepdims=True)


def color_name_forward(img, mask_img):
    """img: (3, H, W) float32; mask_img: (1, H, W) float32 (binary).

    Returns (27,) float32 probability histogram (the values PyTorch computes
    before sorting them into a python list)."""
    c, h, w = img.shape
    assert c == 3
    n = h * w

    # Choose tiling: pixels laid out as (m_pad, 128); tiles of (tm, 128) rows,
    # grid = (NCORES, steps_per_core). Padded pixels get mask=0 -> no bin.
    m_needed = -(-n // LANES)
    tm = MAX_TM
    if m_needed < tm * NCORES:
        tm = max(8, ((-(-m_needed // NCORES) + 7) // 8) * 8)
    gpc = -(-m_needed // (tm * NCORES))          # grid steps per "core" slice
    m_pad = gpc * tm * NCORES
    npad = m_pad * LANES

    img_flat = img.reshape(c, n).astype(jnp.float32)
    mask_flat = mask_img[0].reshape(n).astype(jnp.float32)
    if npad != n:
        img_flat = jnp.pad(img_flat, ((0, 0), (0, npad - n)))
        mask_flat = jnp.pad(mask_flat, (0, npad - n))

    img_t = img_flat.reshape(c, m_pad, LANES)    # sublane-dense layout
    mask_t = mask_flat.reshape(m_pad, LANES)

    partial = pl.pallas_call(
        color_hist_kernel,
        out_shape=jax.ShapeDtypeStruct((NCORES, NUM_COLORS, LANES), jnp.float32),
        grid=(NCORES, gpc),
        in_specs=[
            pl.BlockSpec((3, tm, LANES), lambda cidx, i: (0, cidx * gpc + i, 0)),
            pl.BlockSpec((tm, LANES), lambda cidx, i: (cidx * gpc + i, 0)),
        ],
        out_specs=pl.BlockSpec((None, NUM_COLORS, LANES),
                               lambda cidx, i: (cidx, 0, 0)),
        compiler_params=pltpu.CompilerParams(
            dimension_semantics=("parallel", "arbitrary")),
    )(img_t, mask_t)

    counts = partial.sum(axis=(0, 2))            # (27,) exact integer counts in f32
    probs = counts / jnp.sum(counts)             # matches PyTorch (no zero-mask guard)
    return probs


if __name__ == "__main__":
    key = jax.random.PRNGKey(0)
    k_img, k_mask = jax.random.split(key)

    H = W = 16
    img = jax.random.uniform(k_img, (3, H, W), jnp.float32, minval=0.0, maxval=255.0)
    mask_img = (jax.random.uniform(k_mask, (1, H, W)) > 0.3).astype(jnp.float32)

    probs = jax.block_until_ready(color_name_forward(img, mask_img))

    # Pure-JAX reference (same add-association as the kernel's separable sum).
    colors = jnp.asarray([(r, g, b) for r in _COLOR_STEPS for g in _COLOR_STEPS
                          for b in _COLOR_STEPS], dtype=jnp.float32)      # (27, 3)
    d_ref = (jnp.abs(img[0][None] - colors[:, 0, None, None])
             + jnp.abs(img[1][None] - colors[:, 1, None, None])) \
            + jnp.abs(img[2][None] - colors[:, 2, None, None])            # (27, H, W)
    feat = jnp.argmin(d_ref, axis=0) - (1.0 - mask_img[0]) * NUM_COLORS
    ref_counts = jnp.asarray([jnp.sum(feat == i) for i in range(NUM_COLORS)],
                             dtype=jnp.float32)
    ref_probs = ref_counts / ref_counts.sum()
    assert jnp.allclose(probs, ref_probs, atol=1e-6)

    # Host-side glue matching the PyTorch return value: sorted (idx, prob) list.
    # TODO(synk): the python `sorted(...)` over (index, prob) tuples has no Pallas
    # equivalent; it is done on host.
    feature_list = sorted(enumerate(probs.tolist()), key=lambda x: -x[1])
    assert len(feature_list) == NUM_COLORS
    assert abs(sum(p for _, p in feature_list) - 1.0) < 1e-4

    print("KERNEL_OK")
</pallas_src>

<mosaic_0001>
module attributes {stable_mosaic.version = 11 : i64} {
  func.func @color_hist_kernel(%arg0: i32, %arg1: i32, %arg2: memref<3x8x128xf32, #tpu.memory_space<vmem>>, %arg3: memref<8x128xf32, #tpu.memory_space<vmem>>, %arg4: memref<1x27x128xf32, #tpu.memory_space<vmem>>) attributes {dimension_semantics = [#tpu.dimension_semantics<parallel>, #tpu.dimension_semantics<arbitrary>], iteration_bounds = array<i64: 2, 1>, scalar_prefetch = 0 : i64, scratch_operands = 0 : i64, tpu.core_type = #tpu.core_type<tc>, window_params = [{transform_indices = @transform_0, window_bounds = array<i64: 3, 8, 128>}, {transform_indices = @transform_1, window_bounds = array<i64: 8, 128>}, {transform_indices = @transform_2, window_bounds = array<i64: 1, 27, 128>}]} {
    %c0_i32 = arith.constant 0 : i32
    %0 = arith.cmpi eq, %arg1, %c0_i32 : i32
    %1 = arith.extui %0 : i1 to i32
    %c0_i32_0 = arith.constant 0 : i32
    %2 = arith.cmpi ne, %1, %c0_i32_0 : i32
    scf.if %2 {
      %cst_291 = arith.constant 0.000000e+00 : f32
      %557 = vector.broadcast %cst_291 : f32 to vector<27x128xf32>
      %c0_292 = arith.constant 0 : index
      %c0_293 = arith.constant 0 : index
      %c0_294 = arith.constant 0 : index
      %558 = vector.load %arg4[%c0_292, %c0_293, %c0_294] : memref<1x27x128xf32, #tpu.memory_space<vmem>>, vector<1x27x128xf32>
      %559 = vector.shape_cast %558 : vector<1x27x128xf32> to vector<27x128xf32>
      %560 = vector.shape_cast %557 : vector<27x128xf32> to vector<1x27x128xf32>
      tpu.vector_store %arg4[%c0_292, %c0_293, %c0_294], %560 {strides = array<i32>} : memref<1x27x128xf32, #tpu.memory_space<vmem>>, vector<1x27x128xf32>,
    } else {
    }
    %c0 = arith.constant 0 : index
    %c0_1 = arith.constant 0 : index
    %c0_2 = arith.constant 0 : index
    %3 = vector.load %arg2[%c0, %c0_1, %c0_2] : memref<3x8x128xf32, #tpu.memory_space<vmem>>, vector<1x8x128xf32>
    %4 = vector.shape_cast %3 : vector<1x8x128xf32> to vector<8x128xf32>
    %c1 = arith.constant 1 : index
    %c0_3 = arith.constant 0 : index
    %c0_4 = arith.constant 0 : index
    %5 = vector.load %arg2[%c1, %c0_3, %c0_4] : memref<3x8x128xf32, #tpu.memory_space<vmem>>, vector<1x8x128xf32>
    %6 = vector.shape_cast %5 : vector<1x8x128xf32> to vector<8x128xf32>
    %c2 = arith.constant 2 : index
    %c0_5 = arith.constant 0 : index
    %c0_6 = arith.constant 0 : index
    %7 = vector.load %arg2[%c2, %c0_5, %c0_6] : memref<3x8x128xf32, #tpu.memory_space<vmem>>, vector<1x8x128xf32>
    %8 = vector.shape_cast %7 : vector<1x8x128xf32> to vector<8x128xf32>
    %c0_7 = arith.constant 0 : index
    %c0_8 = arith.constant 0 : index
    %9 = vector.load %arg3[%c0_7, %c0_8] : memref<8x128xf32, #tpu.memory_space<vmem>>, vector<8x128xf32>
    %cst = arith.constant 5.000000e-01 : f32
    %10 = vector.broadcast %cst : f32 to vector<8x128xf32>
    %11 = arith.cmpf ogt, %9, %10 : vector<8x128xf32>
    %cst_9 = arith.constant 0.000000e+00 : f32
    %12 = vector.broadcast %cst_9 : f32 to vector<8x128xf32>
    %13 = arith.subf %4, %12 : vector<8x128xf32>
    %14 = math.absf %13 : vector<8x128xf32>
    %cst_10 = arith.constant 1.270000e+02 : f32
    %15 = vector.broadcast %cst_10 : f32 to vector<8x128xf32>
    %16 = arith.subf %4, %15 : vector<8x128xf32>
    %17 = math.absf %16 : vector<8x128xf32>
    %cst_11 = arith.constant 2.550000e+02 : f32
    %18 = vector.broadcast %cst_11 : f32 to vector<8x128xf32>
    %19 = arith.subf %4, %18 : vector<8x128xf32>
    %20 = math.absf %19 : vector<8x128xf32>
    %cst_12 = arith.constant 0.000000e+00 : f32
    %21 = vector.broadcast %cst_12 : f32 to vector<8x128xf32>
    %22 = arith.subf %6, %21 : vector<8x128xf32>
    %23 = math.absf %22 : vector<8x128xf32>
    %cst_13 = arith.constant 1.270000e+02 : f32
    %24 = vector.broadcast %cst_13 : f32 to vector<8x128xf32>
    %25 = arith.subf %6, %24 : vector<8x128xf32>
    %26 = math.absf %25 : vector<8x128xf32>
    %cst_14 = arith.constant 2.550000e+02 : f32
    %27 = vector.broadcast %cst_14 : f32 to vector<8x128xf32>
    %28 = arith.subf %6, %27 : vector<8x128xf32>
    %29 = math.absf %28 : vector<8x128xf32>
    %cst_15 = arith.constant 0.000000e+00 : f32
    %30 = vector.broadcast %cst_15 : f32 to vector<8x128xf32>
    %31 = arith.subf %8, %30 : vector<8x128xf32>
    %32 = math.absf %31 : vector<8x128xf32>
    %cst_16 = arith.constant 1.270000e+02 : f32
    %33 = vector.broadcast %cst_16 : f32 to vector<8x128xf32>
    %34 = arith.subf %8, %33 : vector<8x128xf32>
    %35 = math.absf %34 : vector<8x128xf32>
    %cst_17 = arith.constant 2.550000e+02 : f32
    %36 = vector.broadcast %cst_17 : f32 to vector<8x128xf32>
    %37 = arith.subf %8, %36 : vector<8x128xf32>
    %38 = math.absf %37 : vector<8x128xf32>
    %39 = arith.addf %14, %23 : vector<8x128xf32>
    %40 = arith.addf %14, %26 : vector<8x128xf32>
    %41 = arith.addf %14, %29 : vector<8x128xf32>
    %42 = arith.addf %17, %23 : vector<8x128xf32>
    %43 = arith.addf %17, %26 : vector<8x128xf32>
    %44 = arith.addf %17, %29 : vector<8x128xf32>
    %45 = arith.addf %20, %23 : vector<8x128xf32>
    %46 = arith.addf %20, %26 : vector<8x128xf32>
    %47 = arith.addf %20, %29 : vector<8x128xf32>
    %48 = arith.addf %39, %32 : vector<8x128xf32>
    %cst_18 = arith.constant 0.000000e+00 : f32
    %49 = vector.broadcast %cst_18 : f32 to vector<8x128xf32>
    %50 = arith.addf %39, %35 : vector<8x128xf32>
    %51 = arith.cmpf olt, %50, %48 : vector<8x128xf32>
    %cst_19 = arith.constant 1.000000e+00 : f32
    %52 = vector.broadcast %cst_19 : f32 to vector<8x128xf32>
    %53 = arith.select %51, %52, %49 : vector<8x128xi1>, vector<8x128xf32>
    %54 = arith.select %51, %50, %48 : vector<8x128xi1>, vector<8x128xf32>
    %55 = arith.addf %39, %38 : vector<8x128xf32>
    %56 = arith.cmpf olt, %55, %54 : vector<8x128xf32>
    %cst_20 = arith.constant 2.000000e+00 : f32
    %57 = vector.broadcast %cst_20 : f32 to vector<8x128xf32>
    %58 = arith.select %56, %57, %53 : vector<8x128xi1>, vector<8x128xf32>
    %59 = arith.select %56, %55, %54 : vector<8x128xi1>, vector<8x128xf32>
    %60 = arith.addf %40, %32 : vector<8x128xf32>
    %61 = arith.cmpf olt, %60, %59 : vector<8x128xf32>
    %cst_21 = arith.constant 3.000000e+00 : f32
    %62 = vector.broadcast %cst_21 : f32 to vector<8x128xf32>
    %63 = arith.select %61, %62, %58 : vector<8x128xi1>, vector<8x128xf32>
    %64 = arith.select %61, %60, %59 : vector<8x128xi1>, vector<8x128xf32>
    %65 = arith.addf %40, %35 : vector<8x128xf32>
    %66 = arith.cmpf olt, %65, %64 : vector<8x128xf32>
    %cst_22 = arith.constant 4.000000e+00 : f32
    %67 = vector.broadcast %cst_22 : f32 to vector<8x128xf32>
    %68 = arith.select %66, %67, %63 : vector<8x128xi1>, vector<8x128xf32>
    %69 = arith.select %66, %65, %64 : vector<8x128xi1>, vector<8x128xf32>
    %70 = arith.addf %40, %38 : vector<8x128xf32>
    %71 = arith.cmpf olt, %70, %69 : vector<8x128xf32>
    %cst_23 = arith.constant 5.000000e+00 : f32
    %72 = vector.broadcast %cst_23 : f32 to vector<8x128xf32>
    %73 = arith.select %71, %72, %68 : vector<8x128xi1>, vector<8x128xf32>
    %74 = arith.select %71, %70, %69 : vector<8x128xi1>, vector<8x128xf32>
    %75 = arith.addf %41, %32 : vector<8x128xf32>
    %76 = arith.cmpf olt, %75, %74 : vector<8x128xf32>
    %cst_24 = arith.constant 6.000000e+00 : f32
    %77 = vector.broadcast %cst_24 : f32 to vector<8x128xf32>
    %78 = arith.select %76, %77, %73 : vector<8x128xi1>, vector<8x128xf32>
    %79 = arith.select %76, %75, %74 : vector<8x128xi1>, vector<8x128xf32>
    %80 = arith.addf %41, %35 : vector<8x128xf32>
    %81 = arith.cmpf olt, %80, %79 : vector<8x128xf32>
    %cst_25 = arith.constant 7.000000e+00 : f32
    %82 = vector.broadcast %cst_25 : f32 to vector<8x128xf32>
    %83 = arith.select %81, %82, %78 : vector<8x128xi1>, vector<8x128xf32>
    %84 = arith.select %81, %80, %79 : vector<8x128xi1>, vector<8x128xf32>
    %85 = arith.addf %41, %38 : vector<8x128xf32>
    %86 = arith.cmpf olt, %85, %84 : vector<8x128xf32>
    %cst_26 = arith.constant 8.000000e+00 : f32
    %87 = vector.broadcast %cst_26 : f32 to vector<8x128xf32>
    %88 = arith.select %86, %87, %83 : vector<8x128xi1>, vector<8x128xf32>
    %89 = arith.select %86, %85, %84 : vector<8x128xi1>, vector<8x128xf32>
    %90 = arith.addf %42, %32 : vector<8x128xf32>
    %91 = arith.cmpf olt, %90, %89 : vector<8x128xf32>
    %cst_27 = arith.constant 9.000000e+00 : f32
    %92 = vector.broadcast %cst_27 : f32 to vector<8x128xf32>
    %93 = arith.select %91, %92, %88 : vector<8x128xi1>, vector<8x128xf32>
    %94 = arith.select %91, %90, %89 : vector<8x128xi1>, vector<8x128xf32>
    %95 = arith.addf %42, %35 : vector<8x128xf32>
    %96 = arith.cmpf olt, %95, %94 : vector<8x128xf32>
    %cst_28 = arith.constant 1.000000e+01 : f32
    %97 = vector.broadcast %cst_28 : f32 to vector<8x128xf32>
    %98 = arith.select %96, %97, %93 : vector<8x128xi1>, vector<8x128xf32>
    %99 = arith.select %96, %95, %94 : vector<8x128xi1>, vector<8x128xf32>
    %100 = arith.addf %42, %38 : vector<8x128xf32>
    %101 = arith.cmpf olt, %100, %99 : vector<8x128xf32>
    %cst_29 = arith.constant 1.100000e+01 : f32
    %102 = vector.broadcast %cst_29 : f32 to vector<8x128xf32>
    %103 = arith.select %101, %102, %98 : vector<8x128xi1>, vector<8x128xf32>
    %104 = arith.select %101, %100, %99 : vector<8x128xi1>, vector<8x128xf32>
    %105 = arith.addf %43, %32 : vector<8x128xf32>
    %106 = arith.cmpf olt, %105, %104 : vector<8x128xf32>
    %cst_30 = arith.constant 1.200000e+01 : f32
    %107 = vector.broadcast %cst_30 : f32 to vector<8x128xf32>
    %108 = arith.select %106, %107, %103 : vector<8x128xi1>, vector<8x128xf32>
    %109 = arith.select %106, %105, %104 : vector<8x128xi1>, vector<8x128xf32>
    %110 = arith.addf %43, %35 : vector<8x128xf32>
    %111 = arith.cmpf olt, %110, %109 : vector<8x128xf32>
    %cst_31 = arith.constant 1.300000e+01 : f32
    %112 = vector.broadcast %cst_31 : f32 to vector<8x128xf32>
    %113 = arith.select %111, %112, %108 : vector<8x128xi1>, vector<8x128xf32>
    %114 = arith.select %111, %110, %109 : vector<8x128xi1>, vector<8x128xf32>
    %115 = arith.addf %43, %38 : vector<8x128xf32>
    %116 = arith.cmpf olt, %115, %114 : vector<8x128xf32>
    %cst_32 = arith.constant 1.400000e+01 : f32
    %117 = vector.broadcast %cst_32 : f32 to vector<8x128xf32>
    %118 = arith.select %116, %117, %113 : vector<8x128xi1>, vector<8x128xf32>
    %119 = arith.select %116, %115, %114 : vector<8x128xi1>, vector<8x128xf32>
    %120 = arith.addf %44, %32 : vector<8x128xf32>
    %121 = arith.cmpf olt, %120, %119 : vector<8x128xf32>
    %cst_33 = arith.constant 1.500000e+01 : f32
    %122 = vector.broadcast %cst_33 : f32 to vector<8x128xf32>
    %123 = arith.select %121, %122, %118 : vector<8x128xi1>, vector<8x128xf32>
    %124 = arith.select %121, %120, %119 : vector<8x128xi1>, vector<8x128xf32>
    %125 = arith.addf %44, %35 : vector<8x128xf32>
    %126 = arith.cmpf olt, %125, %124 : vector<8x128xf32>
    %cst_34 = arith.constant 1.600000e+01 : f32
    %127 = vector.broadcast %cst_34 : f32 to vector<8x128xf32>
    %128 = arith.select %126, %127, %123 : vector<8x128xi1>, vector<8x128xf32>
    %129 = arith.select %126, %125, %124 : vector<8x128xi1>, vector<8x128xf32>
    %130 = arith.addf %44, %38 : vector<8x128xf32>
    %131 = arith.cmpf olt, %130, %129 : vector<8x128xf32>
    %cst_35 = arith.constant 1.700000e+01 : f32
    %132 = vector.broadcast %cst_35 : f32 to vector<8x128xf32>
    %133 = arith.select %131, %132, %128 : vector<8x128xi1>, vector<8x128xf32>
    %134 = arith.select %131, %130, %129 : vector<8x128xi1>, vector<8x128xf32>
    %135 = arith.addf %45, %32 : vector<8x128xf32>
    %136 = arith.cmpf olt, %135, %134 : vector<8x128xf32>
    %cst_36 = arith.constant 1.800000e+01 : f32
    %137 = vector.broadcast %cst_36 : f32 to vector<8x128xf32>
    %138 = arith.select %136, %137, %133 : vector<8x128xi1>, vector<8x128xf32>
    %139 = arith.select %136, %135, %134 : vector<8x128xi1>, vector<8x128xf32>
    %140 = arith.addf %45, %35 : vector<8x128xf32>
    %141 = arith.cmpf olt, %140, %139 : vector<8x128xf32>
    %cst_37 = arith.constant 1.900000e+01 : f32
    %142 = vector.broadcast %cst_37 : f32 to vector<8x128xf32>
    %143 = arith.select %141, %142, %138 : vector<8x128xi1>, vector<8x128xf32>
    %144 = arith.select %141, %140, %139 : vector<8x128xi1>, vector<8x128xf32>
    %145 = arith.addf %45, %38 : vector<8x128xf32>
    %146 = arith.cmpf olt, %145, %144 : vector<8x128xf32>
    %cst_38 = arith.constant 2.000000e+01 : f32
    %147 = vector.broadcast %cst_38 : f32 to vector<8x128xf32>
    %148 = arith.select %146, %147, %143 : vector<8x128xi1>, vector<8x128xf32>
    %149 = arith.select %146, %145, %144 : vector<8x128xi1>, vector<8x128xf32>
    %150 = arith.addf %46, %32 : vector<8x128xf32>
    %151 = arith.cmpf olt, %150, %149 : vector<8x128xf32>
    %cst_39 = arith.constant 2.100000e+01 : f32
    %152 = vector.broadcast %cst_39 : f32 to vector<8x128xf32>
    %153 = arith.select %151, %152, %148 : vector<8x128xi1>, vector<8x128xf32>
    %154 = arith.select %151, %150, %149 : vector<8x128xi1>, vector<8x128xf32>
    %155 = arith.addf %46, %35 : vector<8x128xf32>
    %156 = arith.cmpf olt, %155, %154 : vector<8x128xf32>
    %cst_40 = arith.constant 2.200000e+01 : f32
    %157 = vector.broadcast %cst_40 : f32 to vector<8x128xf32>
    %158 = arith.select %156, %157, %153 : vector<8x128xi1>, vector<8x128xf32>
    %159 = arith.select %156, %155, %154 : vector<8x128xi1>, vector<8x128xf32>
    %160 = arith.addf %46, %38 : vector<8x128xf32>
    %161 = arith.cmpf olt, %160, %159 : vector<8x128xf32>
    %cst_41 = arith.constant 2.300000e+01 : f32
    %162 = vector.broadcast %cst_41 : f32 to vector<8x128xf32>
    %163 = arith.select %161, %162, %158 : vector<8x128xi1>, vector<8x128xf32>
    %164 = arith.select %161, %160, %159 : vector<8x128xi1>, vector<8x128xf32>
    %165 = arith.addf %47, %32 : vector<8x128xf32>
    %166 = arith.cmpf olt, %165, %164 : vector<8x128xf32>
    %cst_42 = arith.constant 2.400000e+01 : f32
    %167 = vector.broadcast %cst_42 : f32 to vector<8x128xf32>
    %168 = arith.select %166, %167, %163 : vector<8x128xi1>, vector<8x128xf32>
    %169 = arith.select %166, %165, %164 : vector<8x128xi1>, vector<8x128xf32>
    %170 = arith.addf %47, %35 : vector<8x128xf32>
    %171 = arith.cmpf olt, %170, %169 : vector<8x128xf32>
    %cst_43 = arith.constant 2.500000e+01 : f32
    %172 = vector.broadcast %cst_43 : f32 to vector<8x128xf32>
    %173 = arith.select %171, %172, %168 : vector<8x128xi1>, vector<8x128xf32>
    %174 = arith.select %171, %170, %169 : vector<8x128xi1>, vector<8x128xf32>
    %175 = arith.addf %47, %38 : vector<8x128xf32>
    %176 = arith.cmpf olt, %175, %174 : vector<8x128xf32>
    %cst_44 = arith.constant 2.600000e+01 : f32
    %177 = vector.broadcast %cst_44 : f32 to vector<8x128xf32>
    %178 = arith.select %176, %177, %173 : vector<8x128xi1>, vector<8x128xf32>
    %cst_45 = arith.constant 0.000000e+00 : f32
    %179 = vector.broadcast %cst_45 : f32 to vector<8x128xf32>
    %180 = arith.cmpf oeq, %178, %179 : vector<8x128xf32>
    %181 = arith.andi %180, %11 : vector<8x128xi1>
    %cst_46 = arith.constant 1.000000e+00 : f32
    %cst_47 = arith.constant 0.000000e+00 : f32
    %182 = vector.broadcast %cst_46 : f32 to vector<8x128xf32>
    %183 = vector.broadcast %cst_47 : f32 to vector<8x128xf32>
    %184 = arith.select %181, %182, %183 : vector<8x128xi1>, vector<8x128xf32>
    %c0_48 = arith.constant 0 : index
    %c0_49 = arith.constant 0 : index
    %c0_50 = arith.constant 0 : index
    %185 = vector.load %arg4[%c0_48, %c0_49, %c0_50] : memref<1x27x128xf32, #tpu.memory_space<vmem>>, vector<1x1x128xf32>
    %186 = vector.shape_cast %185 : vector<1x1x128xf32> to vector<1x128xf32>
    %cst_51 = arith.constant dense<0.000000e+00> : vector<128xf32>
    %187 = vector.multi_reduction <add>, %184, %cst_51 [0] : vector<8x128xf32> to vector<128xf32>
    %188 = vector.shape_cast %187 : vector<128xf32> to vector<1x128xf32>
    %189 = arith.addf %186, %188 : vector<1x128xf32>
    %c0_52 = arith.constant 0 : index
    %c0_53 = arith.constant 0 : index
    %c0_54 = arith.constant 0 : index
    %190 = vector.load %arg4[%c0_52, %c0_53, %c0_54] : memref<1x27x128xf32, #tpu.memory_space<vmem>>, vector<1x1x128xf32>
    %191 = vector.shape_cast %190 : vector<1x1x128xf32> to vector<1x128xf32>
    %192 = vector.shape_cast %189 : vector<1x128xf32> to vector<1x1x128xf32>
    tpu.vector_store %arg4[%c0_52, %c0_53, %c0_54], %192 {strides = array<i32>} : memref<1x27x128xf32, #tpu.memory_space<vmem>>, vector<1x1x128xf32>,
    %cst_55 = arith.constant 1.000000e+00 : f32
    %193 = vector.broadcast %cst_55 : f32 to vector<8x128xf32>
    %194 = arith.cmpf oeq, %178, %193 : vector<8x128xf32>
    %195 = arith.andi %194, %11 : vector<8x128xi1>
    %cst_56 = arith.constant 1.000000e+00 : f32
    %cst_57 = arith.constant 0.000000e+00 : f32
    %196 = vector.broadcast %cst_56 : f32 to vector<8x128xf32>
    %197 = vector.broadcast %cst_57 : f32 to vector<8x128xf32>
    %198 = arith.select %195, %196, %197 : vector<8x128xi1>, vector<8x128xf32>
    %c0_58 = arith.constant 0 : index
    %c1_59 = arith.constant 1 : index
    %c0_60 = arith.constant 0 : index
    %199 = vector.load %arg4[%c0_58, %c1_59, %c0_60] : memref<1x27x128xf32, #tpu.memory_space<vmem>>, vector<1x1x128xf32>
    %200 = vector.shape_cast %199 : vector<1x1x128xf32> to vector<1x128xf32>
    %cst_61 = arith.constant dense<0.000000e+00> : vector<128xf32>
    %201 = vector.multi_reduction <add>, %198, %cst_61 [0] : vector<8x128xf32> to vector<128xf32>
    %202 = vector.shape_cast %201 : vector<128xf32> to vector<1x128xf32>
    %203 = arith.addf %200, %202 : vector<1x128xf32>
    %c0_62 = arith.constant 0 : index
    %c1_63 = arith.constant 1 : index
    %c0_64 = arith.constant 0 : index
    %204 = vector.load %arg4[%c0_62, %c1_63, %c0_64] : memref<1x27x128xf32, #tpu.memory_space<vmem>>, vector<1x1x128xf32>
    %205 = vector.shape_cast %204 : vector<1x1x128xf32> to vector<1x128xf32>
    %206 = vector.shape_cast %203 : vector<1x128xf32> to vector<1x1x128xf32>
    tpu.vector_store %arg4[%c0_62, %c1_63, %c0_64], %206 {strides = array<i32>} : memref<1x27x128xf32, #tpu.memory_space<vmem>>, vector<1x1x128xf32>,
    %cst_65 = arith.constant 2.000000e+00 : f32
    %207 = vector.broadcast %cst_65 : f32 to vector<8x128xf32>
    %208 = arith.cmpf oeq, %178, %207 : vector<8x128xf32>
    %209 = arith.andi %208, %11 : vector<8x128xi1>
    %cst_66 = arith.constant 1.000000e+00 : f32
    %cst_67 = arith.constant 0.000000e+00 : f32
    %210 = vector.broadcast %cst_66 : f32 to vector<8x128xf32>
    %211 = vector.broadcast %cst_67 : f32 to vector<8x128xf32>
    %212 = arith.select %209, %210, %211 : vector<8x128xi1>, vector<8x128xf32>
    %c0_68 = arith.constant 0 : index
    %c2_69 = arith.constant 2 : index
    %c0_70 = arith.constant 0 : index
    %213 = vector.load %arg4[%c0_68, %c2_69, %c0_70] : memref<1x27x128xf32, #tpu.memory_space<vmem>>, vector<1x1x128xf32>
    %214 = vector.shape_cast %213 : vector<1x1x128xf32> to vector<1x128xf32>
    %cst_71 = arith.constant dense<0.000000e+00> : vector<128xf32>
    %215 = vector.multi_reduction <add>, %212, %cst_71 [0] : vector<8x128xf32> to vector<128xf32>
    %216 = vector.shape_cast %215 : vector<128xf32> to vector<1x128xf32>
    %217 = arith.addf %214, %216 : vector<1x128xf32>
    %c0_72 = arith.constant 0 : index
    %c2_73 = arith.constant 2 : index
    %c0_74 = arith.constant 0 : index
    %218 = vector.load %arg4[%c0_72, %c2_73, %c0_74] : memref<1x27x128xf32, #tpu.memory_space<vmem>>, vector<1x1x128xf32>
    %219 = vector.shape_cast %218 : vector<1x1x128xf32> to vector<1x128xf32>
    %220 = vector.shape_cast %217 : vector<1x128xf32> to vector<1x1x128xf32>
    tpu.vector_store %arg4[%c0_72, %c2_73, %c0_74], %220 {strides = array<i32>} : memref<1x27x128xf32, #tpu.memory_space<vmem>>, vector<1x1x128xf32>,
    %cst_75 = arith.constant 3.000000e+00 : f32
    %221 = vector.broadcast %cst_75 : f32 to vector<8x128xf32>
    %222 = arith.cmpf oeq, %178, %221 : vector<8x128xf32>
    %223 = arith.andi %222, %11 : vector<8x128xi1>
    %cst_76 = arith.constant 1.000000e+00 : f32
    %cst_77 = arith.constant 0.000000e+00 : f32
    %224 = vector.broadcast %cst_76 : f32 to vector<8x128xf32>
    %225 = vector.broadcast %cst_77 : f32 to vector<8x128xf32>
    %226 = arith.select %223, %224, %225 : vector<8x128xi1>, vector<8x128xf32>
    %c0_78 = arith.constant 0 : index
    %c3 = arith.constant 3 : index
    %c0_79 = arith.constant 0 : index
    %227 = vector.load %arg4[%c0_78, %c3, %c0_79] : memref<1x27x128xf32, #tpu.memory_space<vmem>>, vector<1x1x128xf32>
    %228 = vector.shape_cast %227 : vector<1x1x128xf32> to vector<1x128xf32>
    %cst_80 = arith.constant dense<0.000000e+00> : vector<128xf32>
    %229 = vector.multi_reduction <add>, %226, %cst_80 [0] : vector<8x128xf32> to vector<128xf32>
    %230 = vector.shape_cast %229 : vector<128xf32> to vector<1x128xf32>
    %231 = arith.addf %228, %230 : vector<1x128xf32>
    %c0_81 = arith.constant 0 : index
    %c3_82 = arith.constant 3 : index
    %c0_83 = arith.constant 0 : index
    %232 = vector.load %arg4[%c0_81, %c3_82, %c0_83] : memref<1x27x128xf32, #tpu.memory_space<vmem>>, vector<1x1x128xf32>
    %233 = vector.shape_cast %232 : vector<1x1x128xf32> to vector<1x128xf32>
    %234 = vector.shape_cast %231 : vector<1x128xf32> to vector<1x1x128xf32>
    tpu.vector_store %arg4[%c0_81, %c3_82, %c0_83], %234 {strides = array<i32>} : memref<1x27x128xf32, #tpu.memory_space<vmem>>, vector<1x1x128xf32>,
    %cst_84 = arith.constant 4.000000e+00 : f32
    %235 = vector.broadcast %cst_84 : f32 to vector<8x128xf32>
    %236 = arith.cmpf oeq, %178, %235 : vector<8x128xf32>
    %237 = arith.andi %236, %11 : vector<8x128xi1>
    %cst_85 = arith.constant 1.000000e+00 : f32
    %cst_86 = arith.constant 0.000000e+00 : f32
    %238 = vector.broadcast %cst_85 : f32 to vector<8x128xf32>
    %239 = vector.broadcast %cst_86 : f32 to vector<8x128xf32>
    %240 = arith.select %237, %238, %239 : vector<8x128xi1>, vector<8x128xf32>
    %c0_87 = arith.constant 0 : index
    %c4 = arith.constant 4 : index
    %c0_88 = arith.constant 0 : index
    %241 = vector.load %arg4[%c0_87, %c4, %c0_88] : memref<1x27x128xf32, #tpu.memory_space<vmem>>, vector<1x1x128xf32>
    %242 = vector.shape_cast %241 : vector<1x1x128xf32> to vector<1x128xf32>
    %cst_89 = arith.constant dense<0.000000e+00> : vector<128xf32>
    %243 = vector.multi_reduction <add>, %240, %cst_89 [0] : vector<8x128xf32> to vector<128xf32>
    %244 = vector.shape_cast %243 : vector<128xf32> to vector<1x128xf32>
    %245 = arith.addf %242, %244 : vector<1x128xf32>
    %c0_90 = arith.constant 0 : index
    %c4_91 = arith.constant 4 : index
    %c0_92 = arith.constant 0 : index
    %246 = vector.load %arg4[%c0_90, %c4_91, %c0_92] : memref<1x27x128xf32, #tpu.memory_space<vmem>>, vector<1x1x128xf32>
    %247 = vector.shape_cast %246 : vector<1x1x128xf32> to vector<1x128xf32>
    %248 = vector.shape_cast %245 : vector<1x128xf32> to vector<1x1x128xf32>
    tpu.vector_store %arg4[%c0_90, %c4_91, %c0_92], %248 {strides = array<i32>} : memref<1x27x128xf32, #tpu.memory_space<vmem>>, vector<1x1x128xf32>,
    %cst_93 = arith.constant 5.000000e+00 : f32
    %249 = vector.broadcast %cst_93 : f32 to vector<8x128xf32>
    %250 = arith.cmpf oeq, %178, %249 : vector<8x128xf32>
    %251 = arith.andi %250, %11 : vector<8x128xi1>
    %cst_94 = arith.constant 1.000000e+00 : f32
    %cst_95 = arith.constant 0.000000e+00 : f32
    %252 = vector.broadcast %cst_94 : f32 to vector<8x128xf32>
    %253 = vector.broadcast %cst_95 : f32 to vector<8x128xf32>
    %254 = arith.select %251, %252, %253 : vector<8x128xi1>, vector<8x128xf32>
    %c0_96 = arith.constant 0 : index
    %c5 = arith.constant 5 : index
    %c0_97 = arith.constant 0 : index
    %255 = vector.load %arg4[%c0_96, %c5, %c0_97] : memref<1x27x128xf32, #tpu.memory_space<vmem>>, vector<1x1x128xf32>
    %256 = vector.shape_cast %255 : vector<1x1x128xf32> to vector<1x128xf32>
    %cst_98 = arith.constant dense<0.000000e+00> : vector<128xf32>
    %257 = vector.multi_reduction <add>, %254, %cst_98 [0] : vector<8x128xf32> to vector<128xf32>
    %258 = vector.shape_cast %257 : vector<128xf32> to vector<1x128xf32>
    %259 = arith.addf %256, %258 : vector<1x128xf32>
    %c0_99 = arith.constant 0 : index
    %c5_100 = arith.constant 5 : index
    %c0_101 = arith.constant 0 : index
    %260 = vector.load %arg4[%c0_99, %c5_100, %c0_101] : memref<1x27x128xf32, #tpu.memory_space<vmem>>, vector<1x1x128xf32>
    %261 = vector.shape_cast %260 : vector<1x1x128xf32> to vector<1x128xf32>
    %262 = vector.shape_cast %259 : vector<1x128xf32> to vector<1x1x128xf32>
    tpu.vector_store %arg4[%c0_99, %c5_100, %c0_101], %262 {strides = array<i32>} : memref<1x27x128xf32, #tpu.memory_space<vmem>>, vector<1x1x128xf32>,
    %cst_102 = arith.constant 6.000000e+00 : f32
    %263 = vector.broadcast %cst_102 : f32 to vector<8x128xf32>
    %264 = arith.cmpf oeq, %178, %263 : vector<8x128xf32>
    %265 = arith.andi %264, %11 : vector<8x128xi1>
    %cst_103 = arith.constant 1.000000e+00 : f32
    %cst_104 = arith.constant 0.000000e+00 : f32
    %266 = vector.broadcast %cst_103 : f32 to vector<8x128xf32>
    %267 = vector.broadcast %cst_104 : f32 to vector<8x128xf32>
    %268 = arith.select %265, %266, %267 : vector<8x128xi1>, vector<8x128xf32>
    %c0_105 = arith.constant 0 : index
    %c6 = arith.constant 6 : index
    %c0_106 = arith.constant 0 : index
    %269 = vector.load %arg4[%c0_105, %c6, %c0_106] : memref<1x27x128xf32, #tpu.memory_space<vmem>>, vector<1x1x128xf32>
    %270 = vector.shape_cast %269 : vector<1x1x128xf32> to vector<1x128xf32>
    %cst_107 = arith.constant dense<0.000000e+00> : vector<128xf32>
    %271 = vector.multi_reduction <add>, %268, %cst_107 [0] : vector<8x128xf32> to vector<128xf32>
    %272 = vector.shape_cast %271 : vector<128xf32> to vector<1x128xf32>
    %273 = arith.addf %270, %272 : vector<1x128xf32>
    %c0_108 = arith.constant 0 : index
    %c6_109 = arith.constant 6 : index
    %c0_110 = arith.constant 0 : index
    %274 = vector.load %arg4[%c0_108, %c6_109, %c0_110] : memref<1x27x128xf32, #tpu.memory_space<vmem>>, vector<1x1x128xf32>
    %275 = vector.shape_cast %274 : vector<1x1x128xf32> to vector<1x128xf32>
    %276 = vector.shape_cast %273 : vector<1x128xf32> to vector<1x1x128xf32>
    tpu.vector_store %arg4[%c0_108, %c6_109, %c0_110], %276 {strides = array<i32>} : memref<1x27x128xf32, #tpu.memory_space<vmem>>, vector<1x1x128xf32>,
    %cst_111 = arith.constant 7.000000e+00 : f32
    %277 = vector.broadcast %cst_111 : f32 to vector<8x128xf32>
    %278 = arith.cmpf oeq, %178, %277 : vector<8x128xf32>
    %279 = arith.andi %278, %11 : vector<8x128xi1>
    %cst_112 = arith.constant 1.000000e+00 : f32
    %cst_113 = arith.constant 0.000000e+00 : f32
    %280 = vector.broadcast %cst_112 : f32 to vector<8x128xf32>
    %281 = vector.broadcast %cst_113 : f32 to vector<8x128xf32>
    %282 = arith.select %279, %280, %281 : vector<8x128xi1>, vector<8x128xf32>
    %c0_114 = arith.constant 0 : index
    %c7 = arith.constant 7 : index
    %c0_115 = arith.constant 0 : index
    %283 = vector.load %arg4[%c0_114, %c7, %c0_115] : memref<1x27x128xf32, #tpu.memory_space<vmem>>, vector<1x1x128xf32>
    %284 = vector.shape_cast %283 : vector<1x1x128xf32> to vector<1x128xf32>
    %cst_116 = arith.constant dense<0.000000e+00> : vector<128xf32>
    %285 = vector.multi_reduction <add>, %282, %cst_116 [0] : vector<8x128xf32> to vector<128xf32>
    %286 = vector.shape_cast %285 : vector<128xf32> to vector<1x128xf32>
    %287 = arith.addf %284, %286 : vector<1x128xf32>
    %c0_117 = arith.constant 0 : index
    %c7_118 = arith.constant 7 : index
    %c0_119 = arith.constant 0 : index
    %288 = vector.load %arg4[%c0_117, %c7_118, %c0_119] : memref<1x27x128xf32, #tpu.memory_space<vmem>>, vector<1x1x128xf32>
    %289 = vector.shape_cast %288 : vector<1x1x128xf32> to vector<1x128xf32>
    %290 = vector.shape_cast %287 : vector<1x128xf32> to vector<1x1x128xf32>
    tpu.vector_store %arg4[%c0_117, %c7_118, %c0_119], %290 {strides = array<i32>} : memref<1x27x128xf32, #tpu.memory_space<vmem>>, vector<1x1x128xf32>,
    %cst_120 = arith.constant 8.000000e+00 : f32
    %291 = vector.broadcast %cst_120 : f32 to vector<8x128xf32>
    %292 = arith.cmpf oeq, %178, %291 : vector<8x128xf32>
    %293 = arith.andi %292, %11 : vector<8x128xi1>
    %cst_121 = arith.constant 1.000000e+00 : f32
    %cst_122 = arith.constant 0.000000e+00 : f32
    %294 = vector.broadcast %cst_121 : f32 to vector<8x128xf32>
    %295 = vector.broadcast %cst_122 : f32 to vector<8x128xf32>
    %296 = arith.select %293, %294, %295 : vector<8x128xi1>, vector<8x128xf32>
    %c0_123 = arith.constant 0 : index
    %c8 = arith.constant 8 : index
    %c0_124 = arith.constant 0 : index
    %297 = vector.load %arg4[%c0_123, %c8, %c0_124] : memref<1x27x128xf32, #tpu.memory_space<vmem>>, vector<1x1x128xf32>
    %298 = vector.shape_cast %297 : vector<1x1x128xf32> to vector<1x128xf32>
    %cst_125 = arith.constant dense<0.000000e+00> : vector<128xf32>
    %299 = vector.multi_reduction <add>, %296, %cst_125 [0] : vector<8x128xf32> to vector<128xf32>
    %300 = vector.shape_cast %299 : vector<128xf32> to vector<1x128xf32>
    %301 = arith.addf %298, %300 : vector<1x128xf32>
    %c0_126 = arith.constant 0 : index
    %c8_127 = arith.constant 8 : index
    %c0_128 = arith.constant 0 : index
    %302 = vector.load %arg4[%c0_126, %c8_127, %c0_128] : memref<1x27x128xf32, #tpu.memory_space<vmem>>, vector<1x1x128xf32>
    %303 = vector.shape_cast %302 : vector<1x1x128xf32> to vector<1x128xf32>
    %304 = vector.shape_cast %301 : vector<1x128xf32> to vector<1x1x128xf32>
    tpu.vector_store %arg4[%c0_126, %c8_127, %c0_128], %304 {strides = array<i32>} : memref<1x27x128xf32, #tpu.memory_space<vmem>>, vector<1x1x128xf32>,
    %cst_129 = arith.constant 9.000000e+00 : f32
    %305 = vector.broadcast %cst_129 : f32 to vector<8x128xf32>
    %306 = arith.cmpf oeq, %178, %305 : vector<8x128xf32>
    %307 = arith.andi %306, %11 : vector<8x128xi1>
    %cst_130 = arith.constant 1.000000e+00 : f32
    %cst_131 = arith.constant 0.000000e+00 : f32
    %308 = vector.broadcast %cst_130 : f32 to vector<8x128xf32>
    %309 = vector.broadcast %cst_131 : f32 to vector<8x128xf32>
    %310 = arith.select %307, %308, %309 : vector<8x128xi1>, vector<8x128xf32>
    %c0_132 = arith.constant 0 : index
    %c9 = arith.constant 9 : index
    %c0_133 = arith.constant 0 : index
    %311 = vector.load %arg4[%c0_132, %c9, %c0_133] : memref<1x27x128xf32, #tpu.memory_space<vmem>>, vector<1x1x128xf32>
    %312 = vector.shape_cast %311 : vector<1x1x128xf32> to vector<1x128xf32>
    %cst_134 = arith.constant dense<0.000000e+00> : vector<128xf32>
    %313 = vector.multi_reduction <add>, %310, %cst_134 [0] : vector<8x128xf32> to vector<128xf32>
    %314 = vector.shape_cast %313 : vector<128xf32> to vector<1x128xf32>
    %315 = arith.addf %312, %314 : vector<1x128xf32>
    %c0_135 = arith.constant 0 : index
    %c9_136 = arith.constant 9 : index
    %c0_137 = arith.constant 0 : index
    %316 = vector.load %arg4[%c0_135, %c9_136, %c0_137] : memref<1x27x128xf32, #tpu.memory_space<vmem>>, vector<1x1x128xf32>
    %317 = vector.shape_cast %316 : vector<1x1x128xf32> to vector<1x128xf32>
    %318 = vector.shape_cast %315 : vector<1x128xf32> to vector<1x1x128xf32>
    tpu.vector_store %arg4[%c0_135, %c9_136, %c0_137], %318 {strides = array<i32>} : memref<1x27x128xf32, #tpu.memory_space<vmem>>, vector<1x1x128xf32>,
    %cst_138 = arith.constant 1.000000e+01 : f32
    %319 = vector.broadcast %cst_138 : f32 to vector<8x128xf32>
    %320 = arith.cmpf oeq, %178, %319 : vector<8x128xf32>
    %321 = arith.andi %320, %11 : vector<8x128xi1>
    %cst_139 = arith.constant 1.000000e+00 : f32
    %cst_140 = arith.constant 0.000000e+00 : f32
    %322 = vector.broadcast %cst_139 : f32 to vector<8x128xf32>
    %323 = vector.broadcast %cst_140 : f32 to vector<8x128xf32>
    %324 = arith.select %321, %322, %323 : vector<8x128xi1>, vector<8x128xf32>
    %c0_141 = arith.constant 0 : index
    %c10 = arith.constant 10 : index
    %c0_142 = arith.constant 0 : index
    %325 = vector.load %arg4[%c0_141, %c10, %c0_142] : memref<1x27x128xf32, #tpu.memory_space<vmem>>, vector<1x1x128xf32>
    %326 = vector.shape_cast %325 : vector<1x1x128xf32> to vector<1x128xf32>
    %cst_143 = arith.constant dense<0.000000e+00> : vector<128xf32>
    %327 = vector.multi_reduction <add>, %324, %cst_143 [0] : vector<8x128xf32> to vector<128xf32>
    %328 = vector.shape_cast %327 : vector<128xf32> to vector<1x128xf32>
    %329 = arith.addf %326, %328 : vector<1x128xf32>
    %c0_144 = arith.constant 0 : index
    %c10_145 = arith.constant 10 : index
    %c0_146 = arith.constant 0 : index
    %330 = vector.load %arg4[%c0_144, %c10_145, %c0_146] : memref<1x27x128xf32, #tpu.memory_space<vmem>>, vector<1x1x128xf32>
    %331 = vector.shape_cast %330 : vector<1x1x128xf32> to vector<1x128xf32>
    %332 = vector.shape_cast %329 : vector<1x128xf32> to vector<1x1x128xf32>
    tpu.vector_store %arg4[%c0_144, %c10_145, %c0_146], %332 {strides = array<i32>} : memref<1x27x128xf32, #tpu.memory_space<vmem>>, vector<1x1x128xf32>,
    %cst_147 = arith.constant 1.100000e+01 : f32
    %333 = vector.broadcast %cst_147 : f32 to vector<8x128xf32>
    %334 = arith.cmpf oeq, %178, %333 : vector<8x128xf32>
    %335 = arith.andi %334, %11 : vector<8x128xi1>
    %cst_148 = arith.constant 1.000000e+00 : f32
    %cst_149 = arith.constant 0.000000e+00 : f32
    %336 = vector.broadcast %cst_148 : f32 to vector<8x128xf32>
    %337 = vector.broadcast %cst_149 : f32 to vector<8x128xf32>
    %338 = arith.select %335, %336, %337 : vector<8x128xi1>, vector<8x128xf32>
    %c0_150 = arith.constant 0 : index
    %c11 = arith.constant 11 : index
    %c0_151 = arith.constant 0 : index
    %339 = vector.load %arg4[%c0_150, %c11, %c0_151] : memref<1x27x128xf32, #tpu.memory_space<vmem>>, vector<1x1x128xf32>
    %340 = vector.shape_cast %339 : vector<1x1x128xf32> to vector<1x128xf32>
    %cst_152 = arith.constant dense<0.000000e+00> : vector<128xf32>
    %341 = vector.multi_reduction <add>, %338, %cst_152 [0] : vector<8x128xf32> to vector<128xf32>
    %342 = vector.shape_cast %341 : vector<128xf32> to vector<1x128xf32>
    %343 = arith.addf %340, %342 : vector<1x128xf32>
    %c0_153 = arith.constant 0 : index
    %c11_154 = arith.constant 11 : index
    %c0_155 = arith.constant 0 : index
    %344 = vector.load %arg4[%c0_153, %c11_154, %c0_155] : memref<1x27x128xf32, #tpu.memory_space<vmem>>, vector<1x1x128xf32>
    %345 = vector.shape_cast %344 : vector<1x1x128xf32> to vector<1x128xf32>
    %346 = vector.shape_cast %343 : vector<1x128xf32> to vector<1x1x128xf32>
    tpu.vector_store %arg4[%c0_153, %c11_154, %c0_155], %346 {strides = array<i32>} : memref<1x27x128xf32, #tpu.memory_space<vmem>>, vector<1x1x128xf32>,
    %cst_156 = arith.constant 1.200000e+01 : f32
    %347 = vector.broadcast %cst_156 : f32 to vector<8x128xf32>
    %348 = arith.cmpf oeq, %178, %347 : vector<8x128xf32>
    %349 = arith.andi %348, %11 : vector<8x128xi1>
    %cst_157 = arith.constant 1.000000e+00 : f32
    %cst_158 = arith.constant 0.000000e+00 : f32
    %350 = vector.broadcast %cst_157 : f32 to vector<8x128xf32>
    %351 = vector.broadcast %cst_158 : f32 to vector<8x128xf32>
    %352 = arith.select %349, %350, %351 : vector<8x128xi1>, vector<8x128xf32>
    %c0_159 = arith.constant 0 : index
    %c12 = arith.constant 12 : index
    %c0_160 = arith.constant 0 : index
    %353 = vector.load %arg4[%c0_159, %c12, %c0_160] : memref<1x27x128xf32, #tpu.memory_space<vmem>>, vector<1x1x128xf32>
    %354 = vector.shape_cast %353 : vector<1x1x128xf32> to vector<1x128xf32>
    %cst_161 = arith.constant dense<0.000000e+00> : vector<128xf32>
    %355 = vector.multi_reduction <add>, %352, %cst_161 [0] : vector<8x128xf32> to vector<128xf32>
    %356 = vector.shape_cast %355 : vector<128xf32> to vector<1x128xf32>
    %357 = arith.addf %354, %356 : vector<1x128xf32>
    %c0_162 = arith.constant 0 : index
    %c12_163 = arith.constant 12 : index
    %c0_164 = arith.constant 0 : index
    %358 = vector.load %arg4[%c0_162, %c12_163, %c0_164] : memref<1x27x128xf32, #tpu.memory_space<vmem>>, vector<1x1x128xf32>
    %359 = vector.shape_cast %358 : vector<1x1x128xf32> to vector<1x128xf32>
    %360 = vector.shape_cast %357 : vector<1x128xf32> to vector<1x1x128xf32>
    tpu.vector_store %arg4[%c0_162, %c12_163, %c0_164], %360 {strides = array<i32>} : memref<1x27x128xf32, #tpu.memory_space<vmem>>, vector<1x1x128xf32>,
    %cst_165 = arith.constant 1.300000e+01 : f32
    %361 = vector.broadcast %cst_165 : f32 to vector<8x128xf32>
    %362 = arith.cmpf oeq, %178, %361 : vector<8x128xf32>
    %363 = arith.andi %362, %11 : vector<8x128xi1>
    %cst_166 = arith.constant 1.000000e+00 : f32
    %cst_167 = arith.constant 0.000000e+00 : f32
    %364 = vector.broadcast %cst_166 : f32 to vector<8x128xf32>
    %365 = vector.broadcast %cst_167 : f32 to vector<8x128xf32>
    %366 = arith.select %363, %364, %365 : vector<8x128xi1>, vector<8x128xf32>
    %c0_168 = arith.constant 0 : index
    %c13 = arith.constant 13 : index
    %c0_169 = arith.constant 0 : index
    %367 = vector.load %arg4[%c0_168, %c13, %c0_169] : memref<1x27x128xf32, #tpu.memory_space<vmem>>, vector<1x1x128xf32>
    %368 = vector.shape_cast %367 : vector<1x1x128xf32> to vector<1x128xf32>
    %cst_170 = arith.constant dense<0.000000e+00> : vector<128xf32>
    %369 = vector.multi_reduction <add>, %366, %cst_170 [0] : vector<8x128xf32> to vector<128xf32>
    %370 = vector.shape_cast %369 : vector<128xf32> to vector<1x128xf32>
    %371 = arith.addf %368, %370 : vector<1x128xf32>
    %c0_171 = arith.constant 0 : index
    %c13_172 = arith.constant 13 : index
    %c0_173 = arith.constant 0 : index
    %372 = vector.load %arg4[%c0_171, %c13_172, %c0_173] : memref<1x27x128xf32, #tpu.memory_space<vmem>>, vector<1x1x128xf32>
    %373 = vector.shape_cast %372 : vector<1x1x128xf32> to vector<1x128xf32>
    %374 = vector.shape_cast %371 : vector<1x128xf32> to vector<1x1x128xf32>
    tpu.vector_store %arg4[%c0_171, %c13_172, %c0_173], %374 {strides = array<i32>} : memref<1x27x128xf32, #tpu.memory_space<vmem>>, vector<1x1x128xf32>,
    %cst_174 = arith.constant 1.400000e+01 : f32
    %375 = vector.broadcast %cst_174 : f32 to vector<8x128xf32>
    %376 = arith.cmpf oeq, %178, %375 : vector<8x128xf32>
    %377 = arith.andi %376, %11 : vector<8x128xi1>
    %cst_175 = arith.constant 1.000000e+00 : f32
    %cst_176 = arith.constant 0.000000e+00 : f32
    %378 = vector.broadcast %cst_175 : f32 to vector<8x128xf32>
    %379 = vector.broadcast %cst_176 : f32 to vector<8x128xf32>
    %380 = arith.select %377, %378, %379 : vector<8x128xi1>, vector<8x128xf32>
    %c0_177 = arith.constant 0 : index
    %c14 = arith.constant 14 : index
    %c0_178 = arith.constant 0 : index
    %381 = vector.load %arg4[%c0_177, %c14, %c0_178] : memref<1x27x128xf32, #tpu.memory_space<vmem>>, vector<1x1x128xf32>
    %382 = vector.shape_cast %381 : vector<1x1x128xf32> to vector<1x128xf32>
    %cst_179 = arith.constant dense<0.000000e+00> : vector<128xf32>
    %383 = vector.multi_reduction <add>, %380, %cst_179 [0] : vector<8x128xf32> to vector<128xf32>
    %384 = vector.shape_cast %383 : vector<128xf32> to vector<1x128xf32>
    %385 = arith.addf %382, %384 : vector<1x128xf32>
    %c0_180 = arith.constant 0 : index
    %c14_181 = arith.constant 14 : index
    %c0_182 = arith.constant 0 : index
    %386 = vector.load %arg4[%c0_180, %c14_181, %c0_182] : memref<1x27x128xf32, #tpu.memory_space<vmem>>, vector<1x1x128xf32>
    %387 = vector.shape_cast %386 : vector<1x1x128xf32> to vector<1x128xf32>
    %388 = vector.shape_cast %385 : vector<1x128xf32> to vector<1x1x128xf32>
    tpu.vector_store %arg4[%c0_180, %c14_181, %c0_182], %388 {strides = array<i32>} : memref<1x27x128xf32, #tpu.memory_space<vmem>>, vector<1x1x128xf32>,
    %cst_183 = arith.constant 1.500000e+01 : f32
    %389 = vector.broadcast %cst_183 : f32 to vector<8x128xf32>
    %390 = arith.cmpf oeq, %178, %389 : vector<8x128xf32>
    %391 = arith.andi %390, %11 : vector<8x128xi1>
    %cst_184 = arith.constant 1.000000e+00 : f32
    %cst_185 = arith.constant 0.000000e+00 : f32
    %392 = vector.broadcast %cst_184 : f32 to vector<8x128xf32>
    %393 = vector.broadcast %cst_185 : f32 to vector<8x128xf32>
    %394 = arith.select %391, %392, %393 : vector<8x128xi1>, vector<8x128xf32>
    %c0_186 = arith.constant 0 : index
    %c15 = arith.constant 15 : index
    %c0_187 = arith.constant 0 : index
    %395 = vector.load %arg4[%c0_186, %c15, %c0_187] : memref<1x27x128xf32, #tpu.memory_space<vmem>>, vector<1x1x128xf32>
    %396 = vector.shape_cast %395 : vector<1x1x128xf32> to vector<1x128xf32>
    %cst_188 = arith.constant dense<0.000000e+00> : vector<128xf32>
    %397 = vector.multi_reduction <add>, %394, %cst_188 [0] : vector<8x128xf32> to vector<128xf32>
    %398 = vector.shape_cast %397 : vector<128xf32> to vector<1x128xf32>
    %399 = arith.addf %396, %398 : vector<1x128xf32>
    %c0_189 = arith.constant 0 : index
    %c15_190 = arith.constant 15 : index
    %c0_191 = arith.constant 0 : index
    %400 = vector.load %arg4[%c0_189, %c15_190, %c0_191] : memref<1x27x128xf32, #tpu.memory_space<vmem>>, vector<1x1x128xf32>
    %401 = vector.shape_cast %400 : vector<1x1x128xf32> to vector<1x128xf32>
    %402 = vector.shape_cast %399 : vector<1x128xf32> to vector<1x1x128xf32>
    tpu.vector_store %arg4[%c0_189, %c15_190, %c0_191], %402 {strides = array<i32>} : memref<1x27x128xf32, #tpu.memory_space<vmem>>, vector<1x1x128xf32>,
    %cst_192 = arith.constant 1.600000e+01 : f32
    %403 = vector.broadcast %cst_192 : f32 to vector<8x128xf32>
    %404 = arith.cmpf oeq, %178, %403 : vector<8x128xf32>
    %405 = arith.andi %404, %11 : vector<8x128xi1>
    %cst_193 = arith.constant 1.000000e+00 : f32
    %cst_194 = arith.constant 0.000000e+00 : f32
    %406 = vector.broadcast %cst_193 : f32 to vector<8x128xf32>
    %407 = vector.broadcast %cst_194 : f32 to vector<8x128xf32>
    %408 = arith.select %405, %406, %407 : vector<8x128xi1>, vector<8x128xf32>
    %c0_195 = arith.constant 0 : index
    %c16 = arith.constant 16 : index
    %c0_196 = arith.constant 0 : index
    %409 = vector.load %arg4[%c0_195, %c16, %c0_196] : memref<1x27x128xf32, #tpu.memory_space<vmem>>, vector<1x1x128xf32>
    %410 = vector.shape_cast %409 : vector<1x1x128xf32> to vector<1x128xf32>
    %cst_197 = arith.constant dense<0.000000e+00> : vector<128xf32>
    %411 = vector.multi_reduction <add>, %408, %cst_197 [0] : vector<8x128xf32> to vector<128xf32>
    %412 = vector.shape_cast %411 : vector<128xf32> to vector<1x128xf32>
    %413 = arith.addf %410, %412 : vector<1x128xf32>
    %c0_198 = arith.constant 0 : index
    %c16_199 = arith.constant 16 : index
    %c0_200 = arith.constant 0 : index
    %414 = vector.load %arg4[%c0_198, %c16_199, %c0_200] : memref<1x27x128xf32, #tpu.memory_space<vmem>>, vector<1x1x128xf32>
    %415 = vector.shape_cast %414 : vector<1x1x128xf32> to vector<1x128xf32>
    %416 = vector.shape_cast %413 : vector<1x128xf32> to vector<1x1x128xf32>
    tpu.vector_store %arg4[%c0_198, %c16_199, %c0_200], %416 {strides = array<i32>} : memref<1x27x128xf32, #tpu.memory_space<vmem>>, vector<1x1x128xf32>,
    %cst_201 = arith.constant 1.700000e+01 : f32
    %417 = vector.broadcast %cst_201 : f32 to vector<8x128xf32>
    %418 = arith.cmpf oeq, %178, %417 : vector<8x128xf32>
    %419 = arith.andi %418, %11 : vector<8x128xi1>
    %cst_202 = arith.constant 1.000000e+00 : f32
    %cst_203 = arith.constant 0.000000e+00 : f32
    %420 = vector.broadcast %cst_202 : f32 to vector<8x128xf32>
    %421 = vector.broadcast %cst_203 : f32 to vector<8x128xf32>
    %422 = arith.select %419, %420, %421 : vector<8x128xi1>, vector<8x128xf32>
    %c0_204 = arith.constant 0 : index
    %c17 = arith.constant 17 : index
    %c0_205 = arith.constant 0 : index
    %423 = vector.load %arg4[%c0_204, %c17, %c0_205] : memref<1x27x128xf32, #tpu.memory_space<vmem>>, vector<1x1x128xf32>
    %424 = vector.shape_cast %423 : vector<1x1x128xf32> to vector<1x128xf32>
    %cst_206 = arith.constant dense<0.000000e+00> : vector<128xf32>
    %425 = vector.multi_reduction <add>, %422, %cst_206 [0] : vector<8x128xf32> to vector<128xf32>
    %426 = vector.shape_cast %425 : vector<128xf32> to vector<1x128xf32>
    %427 = arith.addf %424, %426 : vector<1x128xf32>
    %c0_207 = arith.constant 0 : index
    %c17_208 = arith.constant 17 : index
    %c0_209 = arith.constant 0 : index
    %428 = vector.load %arg4[%c0_207, %c17_208, %c0_209] : memref<1x27x128xf32, #tpu.memory_space<vmem>>, vector<1x1x128xf32>
    %429 = vector.shape_cast %428 : vector<1x1x128xf32> to vector<1x128xf32>
    %430 = vector.shape_cast %427 : vector<1x128xf32> to vector<1x1x128xf32>
    tpu.vector_store %arg4[%c0_207, %c17_208, %c0_209], %430 {strides = array<i32>} : memref<1x27x128xf32, #tpu.memory_space<vmem>>, vector<1x1x128xf32>,
    %cst_210 = arith.constant 1.800000e+01 : f32
    %431 = vector.broadcast %cst_210 : f32 to vector<8x128xf32>
    %432 = arith.cmpf oeq, %178, %431 : vector<8x128xf32>
    %433 = arith.andi %432, %11 : vector<8x128xi1>
    %cst_211 = arith.constant 1.000000e+00 : f32
    %cst_212 = arith.constant 0.000000e+00 : f32
    %434 = vector.broadcast %cst_211 : f32 to vector<8x128xf32>
    %435 = vector.broadcast %cst_212 : f32 to vector<8x128xf32>
    %436 = arith.select %433, %434, %435 : vector<8x128xi1>, vector<8x128xf32>
    %c0_213 = arith.constant 0 : index
    %c18 = arith.constant 18 : index
    %c0_214 = arith.constant 0 : index
    %437 = vector.load %arg4[%c0_213, %c18, %c0_214] : memref<1x27x128xf32, #tpu.memory_space<vmem>>, vector<1x1x128xf32>
    %438 = vector.shape_cast %437 : vector<1x1x128xf32> to vector<1x128xf32>
    %cst_215 = arith.constant dense<0.000000e+00> : vector<128xf32>
    %439 = vector.multi_reduction <add>, %436, %cst_215 [0] : vector<8x128xf32> to vector<128xf32>
    %440 = vector.shape_cast %439 : vector<128xf32> to vector<1x128xf32>
    %441 = arith.addf %438, %440 : vector<1x128xf32>
    %c0_216 = arith.constant 0 : index
    %c18_217 = arith.constant 18 : index
    %c0_218 = arith.constant 0 : index
    %442 = vector.load %arg4[%c0_216, %c18_217, %c0_218] : memref<1x27x128xf32, #tpu.memory_space<vmem>>, vector<1x1x128xf32>
    %443 = vector.shape_cast %442 : vector<1x1x128xf32> to vector<1x128xf32>
    %444 = vector.shape_cast %441 : vector<1x128xf32> to vector<1x1x128xf32>
    tpu.vector_store %arg4[%c0_216, %c18_217, %c0_218], %444 {strides = array<i32>} : memref<1x27x128xf32, #tpu.memory_space<vmem>>, vector<1x1x128xf32>,
    %cst_219 = arith.constant 1.900000e+01 : f32
    %445 = vector.broadcast %cst_219 : f32 to vector<8x128xf32>
    %446 = arith.cmpf oeq, %178, %445 : vector<8x128xf32>
    %447 = arith.andi %446, %11 : vector<8x128xi1>
    %cst_220 = arith.constant 1.000000e+00 : f32
    %cst_221 = arith.constant 0.000000e+00 : f32
    %448 = vector.broadcast %cst_220 : f32 to vector<8x128xf32>
    %449 = vector.broadcast %cst_221 : f32 to vector<8x128xf32>
    %450 = arith.select %447, %448, %449 : vector<8x128xi1>, vector<8x128xf32>
    %c0_222 = arith.constant 0 : index
    %c19 = arith.constant 19 : index
    %c0_223 = arith.constant 0 : index
    %451 = vector.load %arg4[%c0_222, %c19, %c0_223] : memref<1x27x128xf32, #tpu.memory_space<vmem>>, vector<1x1x128xf32>
    %452 = vector.shape_cast %451 : vector<1x1x128xf32> to vector<1x128xf32>
    %cst_224 = arith.constant dense<0.000000e+00> : vector<128xf32>
    %453 = vector.multi_reduction <add>, %450, %cst_224 [0] : vector<8x128xf32> to vector<128xf32>
    %454 = vector.shape_cast %453 : vector<128xf32> to vector<1x128xf32>
    %455 = arith.addf %452, %454 : vector<1x128xf32>
    %c0_225 = arith.constant 0 : index
    %c19_226 = arith.constant 19 : index
    %c0_227 = arith.constant 0 : index
    %456 = vector.load %arg4[%c0_225, %c19_226, %c0_227] : memref<1x27x128xf32, #tpu.memory_space<vmem>>, vector<1x1x128xf32>
    %457 = vector.shape_cast %456 : vector<1x1x128xf32> to vector<1x128xf32>
    %458 = vector.shape_cast %455 : vector<1x128xf32> to vector<1x1x128xf32>
    tpu.vector_store %arg4[%c0_225, %c19_226, %c0_227], %458 {strides = array<i32>} : memref<1x27x128xf32, #tpu.memory_space<vmem>>, vector<1x1x128xf32>,
    %cst_228 = arith.constant 2.000000e+01 : f32
    %459 = vector.broadcast %cst_228 : f32 to vector<8x128xf32>
    %460 = arith.cmpf oeq, %178, %459 : vector<8x128xf32>
    %461 = arith.andi %460, %11 : vector<8x128xi1>
    %cst_229 = arith.constant 1.000000e+00 : f32
    %cst_230 = arith.constant 0.000000e+00 : f32
    %462 = vector.broadcast %cst_229 : f32 to vector<8x128xf32>
    %463 = vector.broadcast %cst_230 : f32 to vector<8x128xf32>
    %464 = arith.select %461, %462, %463 : vector<8x128xi1>, vector<8x128xf32>
    %c0_231 = arith.constant 0 : index
    %c20 = arith.constant 20 : index
    %c0_232 = arith.constant 0 : index
    %465 = vector.load %arg4[%c0_231, %c20, %c0_232] : memref<1x27x128xf32, #tpu.memory_space<vmem>>, vector<1x1x128xf32>
    %466 = vector.shape_cast %465 : vector<1x1x128xf32> to vector<1x128xf32>
    %cst_233 = arith.constant dense<0.000000e+00> : vector<128xf32>
    %467 = vector.multi_reduction <add>, %464, %cst_233 [0] : vector<8x128xf32> to vector<128xf32>
    %468 = vector.shape_cast %467 : vector<128xf32> to vector<1x128xf32>
    %469 = arith.addf %466, %468 : vector<1x128xf32>
    %c0_234 = arith.constant 0 : index
    %c20_235 = arith.constant 20 : index
    %c0_236 = arith.constant 0 : index
    %470 = vector.load %arg4[%c0_234, %c20_235, %c0_236] : memref<1x27x128xf32, #tpu.memory_space<vmem>>, vector<1x1x128xf32>
    %471 = vector.shape_cast %470 : vector<1x1x128xf32> to vector<1x128xf32>
    %472 = vector.shape_cast %469 : vector<1x128xf32> to vector<1x1x128xf32>
    tpu.vector_store %arg4[%c0_234, %c20_235, %c0_236], %472 {strides = array<i32>} : memref<1x27x128xf32, #tpu.memory_space<vmem>>, vector<1x1x128xf32>,
    %cst_237 = arith.constant 2.100000e+01 : f32
    %473 = vector.broadcast %cst_237 : f32 to vector<8x128xf32>
    %474 = arith.cmpf oeq, %178, %473 : vector<8x128xf32>
    %475 = arith.andi %474, %11 : vector<8x128xi1>
    %cst_238 = arith.constant 1.000000e+00 : f32
    %cst_239 = arith.constant 0.000000e+00 : f32
    %476 = vector.broadcast %cst_238 : f32 to vector<8x128xf32>
    %477 = vector.broadcast %cst_239 : f32 to vector<8x128xf32>
    %478 = arith.select %475, %476, %477 : vector<8x128xi1>, vector<8x128xf32>
    %c0_240 = arith.constant 0 : index
    %c21 = arith.constant 21 : index
    %c0_241 = arith.constant 0 : index
    %479 = vector.load %arg4[%c0_240, %c21, %c0_241] : memref<1x27x128xf32, #tpu.memory_space<vmem>>, vector<1x1x128xf32>
    %480 = vector.shape_cast %479 : vector<1x1x128xf32> to vector<1x128xf32>
    %cst_242 = arith.constant dense<0.000000e+00> : vector<128xf32>
    %481 = vector.multi_reduction <add>, %478, %cst_242 [0] : vector<8x128xf32> to vector<128xf32>
    %482 = vector.shape_cast %481 : vector<128xf32> to vector<1x128xf32>
    %483 = arith.addf %480, %482 : vector<1x128xf32>
    %c0_243 = arith.constant 0 : index
    %c21_244 = arith.constant 21 : index
    %c0_245 = arith.constant 0 : index
    %484 = vector.load %arg4[%c0_243, %c21_244, %c0_245] : memref<1x27x128xf32, #tpu.memory_space<vmem>>, vector<1x1x128xf32>
    %485 = vector.shape_cast %484 : vector<1x1x128xf32> to vector<1x128xf32>
    %486 = vector.shape_cast %483 : vector<1x128xf32> to vector<1x1x128xf32>
    tpu.vector_store %arg4[%c0_243, %c21_244, %c0_245], %486 {strides = array<i32>} : memref<1x27x128xf32, #tpu.memory_space<vmem>>, vector<1x1x128xf32>,
    %cst_246 = arith.constant 2.200000e+01 : f32
    %487 = vector.broadcast %cst_246 : f32 to vector<8x128xf32>
    %488 = arith.cmpf oeq, %178, %487 : vector<8x128xf32>
    %489 = arith.andi %488, %11 : vector<8x128xi1>
    %cst_247 = arith.constant 1.000000e+00 : f32
    %cst_248 = arith.constant 0.000000e+00 : f32
    %490 = vector.broadcast %cst_247 : f32 to vector<8x128xf32>
    %491 = vector.broadcast %cst_248 : f32 to vector<8x128xf32>
    %492 = arith.select %489, %490, %491 : vector<8x128xi1>, vector<8x128xf32>
    %c0_249 = arith.constant 0 : index
    %c22 = arith.constant 22 : index
    %c0_250 = arith.constant 0 : index
    %493 = vector.load %arg4[%c0_249, %c22, %c0_250] : memref<1x27x128xf32, #tpu.memory_space<vmem>>, vector<1x1x128xf32>
    %494 = vector.shape_cast %493 : vector<1x1x128xf32> to vector<1x128xf32>
    %cst_251 = arith.constant dense<0.000000e+00> : vector<128xf32>
    %495 = vector.multi_reduction <add>, %492, %cst_251 [0] : vector<8x128xf32> to vector<128xf32>
    %496 = vector.shape_cast %495 : vector<128xf32> to vector<1x128xf32>
    %497 = arith.addf %494, %496 : vector<1x128xf32>
    %c0_252 = arith.constant 0 : index
    %c22_253 = arith.constant 22 : index
    %c0_254 = arith.constant 0 : index
    %498 = vector.load %arg4[%c0_252, %c22_253, %c0_254] : memref<1x27x128xf32, #tpu.memory_space<vmem>>, vector<1x1x128xf32>
    %499 = vector.shape_cast %498 : vector<1x1x128xf32> to vector<1x128xf32>
    %500 = vector.shape_cast %497 : vector<1x128xf32> to vector<1x1x128xf32>
    tpu.vector_store %arg4[%c0_252, %c22_253, %c0_254], %500 {strides = array<i32>} : memref<1x27x128xf32, #tpu.memory_space<vmem>>, vector<1x1x128xf32>,
    %cst_255 = arith.constant 2.300000e+01 : f32
    %501 = vector.broadcast %cst_255 : f32 to vector<8x128xf32>
    %502 = arith.cmpf oeq, %178, %501 : vector<8x128xf32>
    %503 = arith.andi %502, %11 : vector<8x128xi1>
    %cst_256 = arith.constant 1.000000e+00 : f32
    %cst_257 = arith.constant 0.000000e+00 : f32
    %504 = vector.broadcast %cst_256 : f32 to vector<8x128xf32>
    %505 = vector.broadcast %cst_257 : f32 to vector<8x128xf32>
    %506 = arith.select %503, %504, %505 : vector<8x128xi1>, vector<8x128xf32>
    %c0_258 = arith.constant 0 : index
    %c23 = arith.constant 23 : index
    %c0_259 = arith.constant 0 : index
    %507 = vector.load %arg4[%c0_258, %c23, %c0_259] : memref<1x27x128xf32, #tpu.memory_space<vmem>>, vector<1x1x128xf32>
    %508 = vector.shape_cast %507 : vector<1x1x128xf32> to vector<1x128xf32>
    %cst_260 = arith.constant dense<0.000000e+00> : vector<128xf32>
    %509 = vector.multi_reduction <add>, %506, %cst_260 [0] : vector<8x128xf32> to vector<128xf32>
    %510 = vector.shape_cast %509 : vector<128xf32> to vector<1x128xf32>
    %511 = arith.addf %508, %510 : vector<1x128xf32>
    %c0_261 = arith.constant 0 : index
    %c23_262 = arith.constant 23 : index
    %c0_263 = arith.constant 0 : index
    %512 = vector.load %arg4[%c0_261, %c23_262, %c0_263] : memref<1x27x128xf32, #tpu.memory_space<vmem>>, vector<1x1x128xf32>
    %513 = vector.shape_cast %512 : vector<1x1x128xf32> to vector<1x128xf32>
    %514 = vector.shape_cast %511 : vector<1x128xf32> to vector<1x1x128xf32>
    tpu.vector_store %arg4[%c0_261, %c23_262, %c0_263], %514 {strides = array<i32>} : memref<1x27x128xf32, #tpu.memory_space<vmem>>, vector<1x1x128xf32>,
    %cst_264 = arith.constant 2.400000e+01 : f32
    %515 = vector.broadcast %cst_264 : f32 to vector<8x128xf32>
    %516 = arith.cmpf oeq, %178, %515 : vector<8x128xf32>
    %517 = arith.andi %516, %11 : vector<8x128xi1>
    %cst_265 = arith.constant 1.000000e+00 : f32
    %cst_266 = arith.constant 0.000000e+00 : f32
    %518 = vector.broadcast %cst_265 : f32 to vector<8x128xf32>
    %519 = vector.broadcast %cst_266 : f32 to vector<8x128xf32>
    %520 = arith.select %517, %518, %519 : vector<8x128xi1>, vector<8x128xf32>
    %c0_267 = arith.constant 0 : index
    %c24 = arith.constant 24 : index
    %c0_268 = arith.constant 0 : index
    %521 = vector.load %arg4[%c0_267, %c24, %c0_268] : memref<1x27x128xf32, #tpu.memory_space<vmem>>, vector<1x1x128xf32>
    %522 = vector.shape_cast %521 : vector<1x1x128xf32> to vector<1x128xf32>
    %cst_269 = arith.constant dense<0.000000e+00> : vector<128xf32>
    %523 = vector.multi_reduction <add>, %520, %cst_269 [0] : vector<8x128xf32> to vector<128xf32>
    %524 = vector.shape_cast %523 : vector<128xf32> to vector<1x128xf32>
    %525 = arith.addf %522, %524 : vector<1x128xf32>
    %c0_270 = arith.constant 0 : index
    %c24_271 = arith.constant 24 : index
    %c0_272 = arith.constant 0 : index
    %526 = vector.load %arg4[%c0_270, %c24_271, %c0_272] : memref<1x27x128xf32, #tpu.memory_space<vmem>>, vector<1x1x128xf32>
    %527 = vector.shape_cast %526 : vector<1x1x128xf32> to vector<1x128xf32>
    %528 = vector.shape_cast %525 : vector<1x128xf32> to vector<1x1x128xf32>
    tpu.vector_store %arg4[%c0_270, %c24_271, %c0_272], %528 {strides = array<i32>} : memref<1x27x128xf32, #tpu.memory_space<vmem>>, vector<1x1x128xf32>,
    %cst_273 = arith.constant 2.500000e+01 : f32
    %529 = vector.broadcast %cst_273 : f32 to vector<8x128xf32>
    %530 = arith.cmpf oeq, %178, %529 : vector<8x128xf32>
    %531 = arith.andi %530, %11 : vector<8x128xi1>
    %cst_274 = arith.constant 1.000000e+00 : f32
    %cst_275 = arith.constant 0.000000e+00 : f32
    %532 = vector.broadcast %cst_274 : f32 to vector<8x128xf32>
    %533 = vector.broadcast %cst_275 : f32 to vector<8x128xf32>
    %534 = arith.select %531, %532, %533 : vector<8x128xi1>, vector<8x128xf32>
    %c0_276 = arith.constant 0 : index
    %c25 = arith.constant 25 : index
    %c0_277 = arith.constant 0 : index
    %535 = vector.load %arg4[%c0_276, %c25, %c0_277] : memref<1x27x128xf32, #tpu.memory_space<vmem>>, vector<1x1x128xf32>
    %536 = vector.shape_cast %535 : vector<1x1x128xf32> to vector<1x128xf32>
    %cst_278 = arith.constant dense<0.000000e+00> : vector<128xf32>
    %537 = vector.multi_reduction <add>, %534, %cst_278 [0] : vector<8x128xf32> to vector<128xf32>
    %538 = vector.shape_cast %537 : vector<128xf32> to vector<1x128xf32>
    %539 = arith.addf %536, %538 : vector<1x128xf32>
    %c0_279 = arith.constant 0 : index
    %c25_280 = arith.constant 25 : index
    %c0_281 = arith.constant 0 : index
    %540 = vector.load %arg4[%c0_279, %c25_280, %c0_281] : memref<1x27x128xf32, #tpu.memory_space<vmem>>, vector<1x1x128xf32>
    %541 = vector.shape_cast %540 : vector<1x1x128xf32> to vector<1x128xf32>
    %542 = vector.shape_cast %539 : vector<1x128xf32> to vector<1x1x128xf32>
    tpu.vector_store %arg4[%c0_279, %c25_280, %c0_281], %542 {strides = array<i32>} : memref<1x27x128xf32, #tpu.memory_space<vmem>>, vector<1x1x128xf32>,
    %cst_282 = arith.constant 2.600000e+01 : f32
    %543 = vector.broadcast %cst_282 : f32 to vector<8x128xf32>
    %544 = arith.cmpf oeq, %178, %543 : vector<8x128xf32>
    %545 = arith.andi %544, %11 : vector<8x128xi1>
    %cst_283 = arith.constant 1.000000e+00 : f32
    %cst_284 = arith.constant 0.000000e+00 : f32
    %546 = vector.broadcast %cst_283 : f32 to vector<8x128xf32>
    %547 = vector.broadcast %cst_284 : f32 to vector<8x128xf32>
    %548 = arith.select %545, %546, %547 : vector<8x128xi1>, vector<8x128xf32>
    %c0_285 = arith.constant 0 : index
    %c26 = arith.constant 26 : index
    %c0_286 = arith.constant 0 : index
    %549 = vector.load %arg4[%c0_285, %c26, %c0_286] : memref<1x27x128xf32, #tpu.memory_space<vmem>>, vector<1x1x128xf32>
    %550 = vector.shape_cast %549 : vector<1x1x128xf32> to vector<1x128xf32>
    %cst_287 = arith.constant dense<0.000000e+00> : vector<128xf32>
    %551 = vector.multi_reduction <add>, %548, %cst_287 [0] : vector<8x128xf32> to vector<128xf32>
    %552 = vector.shape_cast %551 : vector<128xf32> to vector<1x128xf32>
    %553 = arith.addf %550, %552 : vector<1x128xf32>
    %c0_288 = arith.constant 0 : index
    %c26_289 = arith.constant 26 : index
    %c0_290 = arith.constant 0 : index
    %554 = vector.load %arg4[%c0_288, %c26_289, %c0_290] : memref<1x27x128xf32, #tpu.memory_space<vmem>>, vector<1x1x128xf32>
    %555 = vector.shape_cast %554 : vector<1x1x128xf32> to vector<1x128xf32>
    %556 = vector.shape_cast %553 : vector<1x128xf32> to vector<1x1x128xf32>
    tpu.vector_store %arg4[%c0_288, %c26_289, %c0_290], %556 {strides = array<i32>} : memref<1x27x128xf32, #tpu.memory_space<vmem>>, vector<1x1x128xf32>,
    return
  }
  func.func @transform_0(%arg0: i32, %arg1: i32) -> (i32, i32, i32) {
    %c1_i32 = arith.constant 1 : i32
    %0 = arith.muli %arg0, %c1_i32 : i32
    %1 = arith.addi %0, %arg1 : i32
    %c0_i32 = arith.constant 0 : i32
    %c0_i32_0 = arith.constant 0 : i32
    %c0_i32_1 = arith.constant 0 : i32
    return %c0_i32, %1, %c0_i32_0 : i32, i32, i32
  }
  func.func @transform_1(%arg0: i32, %arg1: i32) -> (i32, i32) {
    %c1_i32 = arith.constant 1 : i32
    %0 = arith.muli %arg0, %c1_i32 : i32
    %1 = arith.addi %0, %arg1 : i32
    %c0_i32 = arith.constant 0 : i32
    %c0_i32_0 = arith.constant 0 : i32
    return %1, %c0_i32 : i32, i32
  }
  func.func @transform_2(%arg0: i32, %arg1: i32) -> (i32, i32, i32) {
    %c0_i32 = arith.constant 0 : i32
    %c0_i32_0 = arith.constant 0 : i32
    %c0_i32_1 = arith.constant 0 : i32
    return %arg0, %c0_i32, %c0_i32_0 : i32, i32, i32
  }
}

</mosaic_0001>

<bundles_post_ra>
// kernel: tpu_custom_call.1
= control target key start
LH: loop header
LB: loop body
LE: loop exit
PB: predicated region body
PF: predicated region fallthrough
CT: control target
= control target key end

     0   :  { %7 = vsyncpa [#allocation3], 0  ;;  %s1413_s0 = inlined_call_operand.hbm [shape: f32[3,16,128], index: 0, kind: input, shape index: {}]   ;;  %s1414_s1 = inlined_call_operand.hbm [shape: f32[16,128], index: 1, kind: input, shape index: {}]   ;;  %s1415_s2 = inlined_call_operand.vmem [shape: f32[2,27,128], index: 2, kind: output, shape index: {}]  }
   0x1   :  { %9 = vsyncpa [#allocation3 + $0x1], 0 }
   0x2   :  { %10 = vsyncpa [#allocation5], 0 }
   0x3   :  { %12 = vsyncpa [#allocation5 + $0x1], 0  ;;  %s1014_s9 = smov 0   ;;  %s1016_s10 = smov 0  }
   0x4   :  { %s1018_s11 = smov 0   ;;  %s1020_s12 = smov 0  }
   0x5   :  { %s1022_s13 = smov 0   ;;  %s1024_s14 = smov 0  }
   0x6 LB: > { %s791_s15 = sadd.s32 4294967295, %s993_s14   ;;  %s30_s16 = sadd.s32 1, %s989_s13  ;;  %s993_s14 = sphi %s1024_s14, %s18_s14   ;;  %s989_s13 = sphi %s1022_s13, %s1436_s13   ;;  %s985_s12 = sphi %s1020_s12, %s1435_s12   ;;  %s981_s11 = sphi %s1018_s11, %s1434_s11   ;;  %s977_s10 = sphi %s1016_s10, %s1433_s10   ;;  %s973_s9 = sphi %s1014_s9, %s1432_s9  }
   0x7   : > { %p32_p0 = scmp.ge.s32.totalorder %s30_s16, 2  ;;  %s39_s17 = sadd.s32 1, %s981_s11 }
   0x8   : > { %p46_p1 = scmp.ne.s32.totalorder %s981_s11, %s977_s10  ;;  %p47_p2 = scmp.eq.s32.totalorder %s993_s14, 0 }
   0x9   : > { %s1438_s16 = smov (%p32_p0, %s30_s16), 0  ;;  %p52_p4 = scmp.ne.s32.totalorder %s977_s10, %s973_s9 }
   0xa   : > { %p48_p3 = por %p47_p2, %p46_p1  ;;  %s36_s18 = ssub.s32 %s989_s13, %s1438_s16 }
   0xb   : > { %p53_p5 = scmp.eq.s32.totalorder %s791_s15, 0  ;;  %p37_p6 = scmp.eq.s32.totalorder %s36_s18, 0 }
   0xc   : > { %p826_p8 = scmp.lt.s32.totalorder %s993_s14, 2  ;;  %s130_s21 = sand.u32 1, %s981_s11  }
   0xd   : > { %p1053_p7 = por %p53_p5, %p52_p4  ;;  %s795_s22 = sshll.u32 %s989_s13, 3 }
   0xe   : > { %s1059_s20 = scalar_select %p37_p6, %s981_s11, %s39_s17  }
   0xf   : > { %s813_s23 = smul.u32 24, %s130_s21  ;;  %s139_s26 = scalar_lea.hbm %s1413_s0, %s795_s22 }
  0x10   : > { %p1066_p9 = pnand %p826_p8, %p48_p3  ;;  %s140_s28 = sshll.u32 %s139_s26, 4  ;;  %s141_s28 = int_to_ptr.hbm [resolvable:$true] %s140_s28 }
  0x11   : > { %s134_s29 = scalar_lea.vmem [#allocation2], %s813_s23  ;;  %p798_p10 = scmp.ge.s32.totalorder %s993_s14, 1 }
  0x12   : > { %s142_s30 = sshll.u32 %s134_s29, 4  ;;  %s131_s3 = scalar_lea.sflag [#allocation3], %s130_s21  ;;  %s143_s30 = int_to_ptr.vmem [resolvable:$true] %s142_s30 }
  0x13   : > { %s995_s4 = smov 256   ;;  %s996_s5 = smov 128  }
  0x14   : > { %s997_s6 = smov 8   ;;  %p170_p11 = scmp.lt.s32.totalorder %s993_s14, 3 }
  0x15   : > { %822 = dma.hbm_to_vmem [thread:$0]  (!%p1066_p9), %s141_s28, 384, %s143_s30, %s131_s3, %s995_s4, %s996_s5, %s997_s6  }
  0x16   : > { %s796_s7 = sshll.u32 %s130_s21, 3  ;;  %s161_s15 = scalar_lea.hbm %s1414_s1, %s795_s22 }
  0x17   : > { %p171_p12 = pnand %p798_p10, %p170_p11  ;;  %s163_s17 = sshll.u32 %s161_s15, 4  ;;  %s164_s17 = int_to_ptr.hbm [resolvable:$true] %s163_s17 }
  0x18   : > { %s156_s18 = scalar_lea.vmem [#allocation4], %s796_s7  ;;  %s153_s24 = scalar_lea.sflag [#allocation5], %s130_s21 }
  0x19   : > { %s165_s23 = sshll.u32 %s156_s18, 4  ;;  %174 = sbr.rel (%p171_p12) target bundleno = 167 (0xa7), region = 28  ;;  %s166_s23 = int_to_ptr.vmem [resolvable:$true] %s165_s23 }
  0x1a   : > { %825 = dma.hbm_to_vmem [thread:$0]  (!%p1066_p9), %s164_s17, 128, %s166_s23, %s153_s24  }
  0x1b   : > { %s176_s25 = sand.u32 (!%p171_p12), 1, %s977_s10  }
  0x1c   : > { %s814_s26 = smul.u32 (!%p171_p12), 24, %s176_s25  ;;  %s177_s28 = scalar_lea.sflag (!%p171_p12), [#allocation3], %s176_s25 }
  0x1e   : > { %s180_s29 = scalar_lea.vmem [#allocation2], %s814_s26 }
  0x1f   : > { %964 = dma.done.wait (%p1053_p7), %s177_s28, 384  }
  0x20   : > { %966 = vsyncadd (%p1053_p7), %s177_s28, 4294966912  ;;  %s799_s22 = sshll.u32 %s176_s25, 3  ;;  %s187_s30 = scalar_lea.sflag [#allocation5], %s176_s25 }
  0x21   : > { %s1084_s3 = scalar_lea.vmem [#allocation4], %s799_s22 }
  0x22   : > { %968 = dma.done.wait (%p1053_p7), %s187_s30, 128  }
  0x23   : > { %970 = vsyncadd (%p1053_p7), %s187_s30, 4294967168  ;;  %p219_p13 = scmp.lt.s32.totalorder %s985_s12, 1  ;;  %v998_v0 = vmov 0.0   ;;  %v1101_v1 = vld [vmem:[%s180_s29] sm:$0xff]  ;;  %v802_v2 = vld [vmem:[%s180_s29 + $0x8] sm:$0xff] }
  0x24   : > { %v803_v3 = vld [vmem:[%s180_s29 + $0x10] sm:$0xff]  ;;  %v239_v4 = vand.u32 2147483647, %v1101_v1  ;;  %v1108_v5 = vand.u32 2147483647, %v802_v2  ;;  %v806_v6 = vadd.f32 -127.0, %v802_v2 }
  0x25   : > { %s1440_s12 = smov (!%p219_p13, %s985_s12), 1  ;;  %v807_v7 = vadd.f32 -255.0, %v802_v2  ;;  %v808_v8 = vadd.f32 -127.0, %v803_v3  ;;  %v1112_v10 = vand.u32 2147483647, %v803_v3  ;;  %v809_v11 = vadd.f32 -255.0, %v803_v3 }
  0x26   : > { %s812_s21 = sshll.u32 %s1440_s12, 5  ;;  %v1110_v9 = vand.u32 2147483647, %v806_v6  ;;  %v254_v12 = vadd.f32 %v1108_v5, %v239_v4  ;;  %v804_v20 = vadd.f32 -127.0, %v1101_v1  ;;  %v805_v52 = vadd.f32 -255.0, %v1101_v1 }
  0x27   : > { %s1095_s5 = scalar_lea.vmem %s1415_s2, %s812_s21  ;;  %v1115_v13 = vand.u32 2147483647, %v808_v8  ;;  %v1117_v14 = vand.u32 2147483647, %v809_v11  ;;  %v1121_v17 = vand.u32 2147483647, %v807_v7 }
  0x28   : > { %228 = vst [vmem:[%s1095_s5] sm:$0xff] %v998_v0  ;;  %v255_v15 = vadd.f32 %v1110_v9, %v239_v4  ;;  %v263_v16 = vadd.f32 %v254_v12, %v1112_v10  ;;  %v241_v28 = vand.u32 2147483647, %v804_v20  ;;  %v243_v60 = vand.u32 2147483647, %v805_v52 }
  0x29   : > { %229 = vst [vmem:[%s1095_s5 + $0x8] sm:$0xff] %v998_v0  ;;  %v264_v18 = vadd.f32 %v254_v12, %v1115_v13  ;;  %v268_v19 = vadd.f32 %v254_v12, %v1117_v14  ;;  %v256_v24 = vadd.f32 %v1121_v17, %v239_v4 }
  0x2a   : > { %230 = vst [vmem:[%s1095_s5 + $0x10] sm:$0xff] %v998_v0  ;;  %v272_v21 = vadd.f32 %v255_v15, %v1112_v10  ;;  %v276_v25 = vadd.f32 %v255_v15, %v1115_v13  ;;  %v280_v29 = vadd.f32 %v255_v15, %v1117_v14  ;;  %v257_v35 = vadd.f32 %v1108_v5, %v241_v28 }
  0x2b   : > { %231 = vst [vmem:[%s1095_s5 + $0x18] sm:$0x7] %v998_v0  ;;  %vm265_vm0 = vcmp.lt.f32.partialorder %v264_v18, %v263_v16  ;;  %v284_v32 = vadd.f32 %v256_v24, %v1112_v10  ;;  %v288_v36 = vadd.f32 %v256_v24, %v1115_v13  ;;  %v292_v39 = vadd.f32 %v256_v24, %v1117_v14 }
  0x2c   : > { %v266_v22 = vsel %vm265_vm0, 1.0, %v998_v0  ;;  %v267_v23 = vsel %vm265_vm0, %v264_v18, %v263_v16  ;;  %v296_v42 = vadd.f32 %v257_v35, %v1112_v10  ;;  %v258_v45 = vadd.f32 %v1110_v9, %v241_v28 }
  0x2d   : > { %vm269_vm1 = vcmp.lt.f32.partialorder %v268_v19, %v267_v23  ;;  %v300_v46 = vadd.f32 %v257_v35, %v1115_v13  ;;  %v304_v49 = vadd.f32 %v257_v35, %v1117_v14  ;;  %v259_v56 = vadd.f32 %v1121_v17, %v241_v28 }
  0x2e   : > { %v270_v26 = vsel %vm269_vm1, 2.0, %v266_v22  ;;  %v271_v27 = vsel %vm269_vm1, %v268_v19, %v267_v23  ;;  %v308_v53 = vadd.f32 %v258_v45, %v1112_v10  ;;  %v312_v57 = vadd.f32 %v258_v45, %v1115_v13 }
  0x2f   : > { %vm273_vm2 = vcmp.lt.f32.partialorder %v272_v21, %v271_v27  ;;  %v316_v61 = vadd.f32 %v258_v45, %v1117_v14  ;;  %v320_v1 = vadd.f32 %v259_v56, %v1112_v10  ;;  %v260_v4 = vadd.f32 %v1108_v5, %v243_v60 }
  0x30   : > { %v274_v30 = vsel %vm273_vm2, 3.0, %v270_v26  ;;  %v275_v31 = vsel %vm273_vm2, %v272_v21, %v271_v27  ;;  %v324_v6 = vadd.f32 %v259_v56, %v1115_v13  ;;  %v328_v11 = vadd.f32 %v259_v56, %v1117_v14 }
  0x31   : > { %vm277_vm3 = vcmp.lt.f32.partialorder %v276_v25, %v275_v31  ;;  %v332_v16 = vadd.f32 %v260_v4, %v1112_v10  ;;  %v261_v20 = vadd.f32 %v1110_v9, %v243_v60  ;;  %v336_v5 = vadd.f32 %v260_v4, %v1115_v13 }
  0x32   : > { %v278_v33 = vsel %vm277_vm3, 4.0, %v274_v30  ;;  %v279_v34 = vsel %vm277_vm3, %v276_v25, %v275_v31  ;;  %v340_v23 = vadd.f32 %v260_v4, %v1117_v14 }
  0x33   : > { %vm281_vm4 = vcmp.lt.f32.partialorder %v280_v29, %v279_v34  ;;  %v344_v26 = vadd.f32 %v261_v20, %v1112_v10  ;;  %v348_v9 = vadd.f32 %v261_v20, %v1115_v13 }
  0x34   : > { %v282_v37 = vsel %vm281_vm4, 5.0, %v278_v33  ;;  %v283_v38 = vsel %vm281_vm4, %v280_v29, %v279_v34  ;;  %v262_v29 = vadd.f32 %v1121_v17, %v243_v60 }
  0x35   : > { %vm285_vm5 = vcmp.lt.f32.partialorder %v284_v32, %v283_v38 }
  0x36   : > { %v286_v40 = vsel %vm285_vm5, 6.0, %v282_v37  ;;  %v287_v41 = vsel %vm285_vm5, %v284_v32, %v283_v38  ;;  %v352_v32 = vadd.f32 %v261_v20, %v1117_v14  ;;  %v356_v35 = vadd.f32 %v262_v29, %v1112_v10 }
  0x37   : > { %vm289_vm6 = vcmp.lt.f32.partialorder %v288_v36, %v287_v41  ;;  %v360_v38 = vadd.f32 %v262_v29, %v1115_v13 }
  0x38   : > { %v290_v43 = vsel %vm289_vm6, 7.0, %v286_v40  ;;  %v291_v44 = vsel %vm289_vm6, %v288_v36, %v287_v41  ;;  %v364_v40 = vadd.f32 %v262_v29, %v1117_v14  ;;  %v1160_v41 = vld [vmem:[%s1084_s3] sm:$0xff] }
  0x39   : > { %vm293_vm7 = vcmp.lt.f32.partialorder %v292_v39, %v291_v44 }
  0x3a   : > { %v294_v47 = vsel %vm293_vm7, 8.0, %v290_v43  ;;  %v295_v48 = vsel %vm293_vm7, %v292_v39, %v291_v44 }
  0x3b   : > { %vm297_vm8 = vcmp.lt.f32.partialorder %v296_v42, %v295_v48 }
  0x3c   : > { %v298_v50 = vsel %vm297_vm8, 9.0, %v294_v47  ;;  %v299_v51 = vsel %vm297_vm8, %v296_v42, %v295_v48 }
  0x3d   : > { %vm301_vm9 = vcmp.lt.f32.partialorder %v300_v46, %v299_v51 }
  0x3e   : > { %v302_v54 = vsel %vm301_vm9, 10.0, %v298_v50  ;;  %v303_v55 = vsel %vm301_vm9, %v300_v46, %v299_v51  ;;  %vm238_vm9 = vcmp.gt.f32.partialorder %v1160_v41, 0.5 }
  0x3f   : > { %vm305_vm10 = vcmp.lt.f32.partialorder %v304_v49, %v303_v55 }
  0x40   : > { %v306_v58 = vsel %vm305_vm10, 11.0, %v302_v54  ;;  %v307_v59 = vsel %vm305_vm10, %v304_v49, %v303_v55 }
  0x41   : > { %vm309_vm11 = vcmp.lt.f32.partialorder %v308_v53, %v307_v59 }
  0x42   : > { %v310_v62 = vsel %vm309_vm11, 12.0, %v306_v58  ;;  %v311_v63 = vsel %vm309_vm11, %v308_v53, %v307_v59 }
  0x43   : > { %vm313_vm12 = vcmp.lt.f32.partialorder %v312_v57, %v311_v63 }
  0x44   : > { %v314_v2 = vsel %vm313_vm12, 13.0, %v310_v62  ;;  %v315_v3 = vsel %vm313_vm12, %v312_v57, %v311_v63 }
  0x45   : > { %vm317_vm13 = vcmp.lt.f32.partialorder %v316_v61, %v315_v3 }
  0x46   : > { %v318_v7 = vsel %vm317_vm13, 14.0, %v314_v2  ;;  %v319_v8 = vsel %vm317_vm13, %v316_v61, %v315_v3 }
  0x47   : > { %vm321_vm14 = vcmp.lt.f32.partialorder %v320_v1, %v319_v8 }
  0x48   : > { %v322_v12 = vsel %vm321_vm14, 15.0, %v318_v7  ;;  %v323_v15 = vsel %vm321_vm14, %v320_v1, %v319_v8 }
  0x49   : > { %vm325_vm15 = vcmp.lt.f32.partialorder %v324_v6, %v323_v15 }
  0x4a   : > { %v326_v18 = vsel %vm325_vm15, 16.0, %v322_v12  ;;  %v327_v19 = vsel %vm325_vm15, %v324_v6, %v323_v15 }
  0x4b   : > { %vm329_vm0 = vcmp.lt.f32.partialorder %v328_v11, %v327_v19 }
  0x4c   : > { %v330_v21 = vsel %vm329_vm0, 17.0, %v326_v18  ;;  %v331_v22 = vsel %vm329_vm0, %v328_v11, %v327_v19  ;;  %v370_v18 = vld [vmem:[%s1095_s5] sm:$0x1] }
  0x4d   : > { %vm333_vm1 = vcmp.lt.f32.partialorder %v332_v16, %v331_v22 }
  0x4e   : > { %v334_v24 = vsel %vm333_vm1, 18.0, %v330_v21  ;;  %v335_v25 = vsel %vm333_vm1, %v332_v16, %v331_v22 }
  0x4f   : > { %vm337_vm2 = vcmp.lt.f32.partialorder %v336_v5, %v335_v25 }
  0x50   : > { %v338_v27 = vsel %vm337_vm2, 19.0, %v334_v24  ;;  %v339_v28 = vsel %vm337_vm2, %v336_v5, %v335_v25 }
  0x51   : > { %vm341_vm3 = vcmp.lt.f32.partialorder %v340_v23, %v339_v28 }
  0x52   : > { %v342_v30 = vsel %vm341_vm3, 20.0, %v338_v27  ;;  %v343_v31 = vsel %vm341_vm3, %v340_v23, %v339_v28  ;;  %v382_v23 = vld [vmem:[%s1095_s5 + $0x1] sm:$0x1]  ;;  %v394_v28 = vld [vmem:[%s1095_s5 + $0x2] sm:$0x1] }
  0x53   : > { %vm345_vm4 = vcmp.lt.f32.partialorder %v344_v26, %v343_v31 }
  0x54   : > { %v346_v33 = vsel %vm345_vm4, 21.0, %v342_v30  ;;  %v347_v34 = vsel %vm345_vm4, %v344_v26, %v343_v31 }
  0x55   : > { %vm349_vm5 = vcmp.lt.f32.partialorder %v348_v9, %v347_v34 }
  0x56   : > { %v350_v36 = vsel %vm349_vm5, 22.0, %v346_v33  ;;  %v351_v37 = vsel %vm349_vm5, %v348_v9, %v347_v34  ;;  %v406_v34 = vld [vmem:[%s1095_s5 + $0x3] sm:$0x1] }
  0x57   : > { %vm353_vm6 = vcmp.lt.f32.partialorder %v352_v32, %v351_v37 }
  0x58   : > { %v354_v17 = vsel %vm353_vm6, 23.0, %v350_v36  ;;  %v355_v39 = vsel %vm353_vm6, %v352_v32, %v351_v37 }
  0x59   : > { %vm357_vm7 = vcmp.lt.f32.partialorder %v356_v35, %v355_v39 }
  0x5a   : > { %v358_v42 = vsel %vm357_vm7, 24.0, %v354_v17  ;;  %v359_v43 = vsel %vm357_vm7, %v356_v35, %v355_v39  ;;  %v418_v39 = vld [vmem:[%s1095_s5 + $0x4] sm:$0x1] }
  0x5b   : > { %vm361_vm8 = vcmp.lt.f32.partialorder %v360_v38, %v359_v43 }
  0x5c   : > { %v362_v44 = vsel %vm361_vm8, 25.0, %v358_v42  ;;  %v363_v45 = vsel %vm361_vm8, %v360_v38, %v359_v43 }
  0x5d   : > { %vm365_vm10 = vcmp.lt.f32.partialorder %v364_v40, %v363_v45 }
  0x5e   : > { %v1163_v10 = vsel %vm365_vm10, 26.0, %v362_v44 }
  0x5f   : > { %vm367_vm11 = vcmp.eq.f32.partialorder %v1163_v10, 0.0  ;;  %vm379_vm12 = vcmp.eq.f32.partialorder %v1163_v10, 1.0  ;;  %vm391_vm13 = vcmp.eq.f32.partialorder %v1163_v10, 2.0  ;;  %vm403_vm15 = vcmp.eq.f32.partialorder %v1163_v10, 3.0 }
  0x60   : > { %vm368_vm14 = vmand %vm367_vm11, %vm238_vm9  ;;  %vm415_vm1 = vcmp.eq.f32.partialorder %v1163_v10, 4.0  ;;  %vm427_vm2 = vcmp.eq.f32.partialorder %v1163_v10, 5.0  ;;  %vm439_vm4 = vcmp.eq.f32.partialorder %v1163_v10, 6.0  ;;  %vm451_vm5 = vcmp.eq.f32.partialorder %v1163_v10, 7.0 }
  0x61   : > { %v369_v13 = vsel %vm368_vm14, 1.0, %v998_v0  ;;  %vm380_vm0 = vmand %vm379_vm12, %vm238_vm9  ;;  %vm463_vm7 = vcmp.eq.f32.partialorder %v1163_v10, 8.0  ;;  %vm475_vm8 = vcmp.eq.f32.partialorder %v1163_v10, 9.0  ;;  %vm487_vm11 = vcmp.eq.f32.partialorder %v1163_v10, 10.0 }
  0x62   : > { %v371_v14 = vrot.slane %v369_v13, 4  ;;  %v381_v46 = vsel %vm380_vm0, 1.0, %v998_v0  ;;  %vm392_vm3 = vmand %vm391_vm13, %vm238_vm9  ;;  %vm499_vm13 = vcmp.eq.f32.partialorder %v1163_v10, 11.0 }
  0x63   : > { %v383_v47 = vrot.slane %v381_v46, 4  ;;  %v393_v48 = vsel %vm392_vm3, 1.0, %v998_v0  ;;  %vm404_vm6 = vmand %vm403_vm15, %vm238_vm9  ;;  %vm511_vm15 = vcmp.eq.f32.partialorder %v1163_v10, 12.0  ;;  %vm547_vm3 = vcmp.eq.f32.partialorder %v1163_v10, 15.0 }
  0x64   : > { %v372_v49 = vadd.f32 %v371_v14, %v369_v13  ;;  %v395_v50 = vrot.slane %v393_v48, 4  ;;  %v405_v51 = vsel %vm404_vm6, 1.0, %v998_v0  ;;  %vm416_vm10 = vmand %vm415_vm1, %vm238_vm9  ;;  %vm523_vm1 = vcmp.eq.f32.partialorder %v1163_v10, 13.0  ;;  %v430_v13 = vld [vmem:[%s1095_s5 + $0x5] sm:$0x1] }
  0x65   : > { %v384_v52 = vadd.f32 %v383_v47, %v381_v46  ;;  %v407_v53 = vrot.slane %v405_v51, 4  ;;  %v417_v54 = vsel %vm416_vm10, 1.0, %v998_v0  ;;  %vm428_vm12 = vmand %vm427_vm2, %vm238_vm9  ;;  %vm535_vm2 = vcmp.eq.f32.partialorder %v1163_v10, 14.0 }
  0x66   : > { %v373_v55 = vrot.slane %v372_v49, 2  ;;  %v396_v56 = vadd.f32 %v395_v50, %v393_v48  ;;  %v419_v57 = vrot.slane %v417_v54, 4  ;;  %v429_v58 = vsel %vm428_vm12, 1.0, %v998_v0  ;;  %vm440_vm14 = vmand %vm439_vm4, %vm238_vm9  ;;  %v442_v50 = vld [vmem:[%s1095_s5 + $0x6] sm:$0x1] }
  0x67   : > { %v385_v59 = vrot.slane %v384_v52, 2  ;;  %v408_v60 = vadd.f32 %v407_v53, %v405_v51  ;;  %v431_v61 = vrot.slane %v429_v58, 4  ;;  %v441_v62 = vsel %vm440_vm14, 1.0, %v998_v0  ;;  %vm452_vm0 = vmand %vm451_vm5, %vm238_vm9 }
  0x68   : > { %v374_v63 = vadd.f32 %v373_v55, %v372_v49  ;;  %v397_v1 = vrot.slane %v396_v56, 2  ;;  %v420_v2 = vadd.f32 %v419_v57, %v417_v54  ;;  %v443_v3 = vrot.slane %v441_v62, 4  ;;  %vm1220_vm4 = vmand %vm463_vm7, %vm238_vm9 }
  0x69   : > { %v386_v4 = vadd.f32 %v385_v59, %v384_v52  ;;  %v409_v6 = vrot.slane %v408_v60, 2  ;;  %v432_v7 = vadd.f32 %v431_v61, %v429_v58  ;;  %v453_v8 = vsel %vm452_vm0, 1.0, %v998_v0  ;;  %vm1229_vm5 = vmand %vm475_vm8, %vm238_vm9 }
  0x6a   : > { %v375_v11 = vrot.slane %v374_v63, 1  ;;  %v398_v12 = vadd.f32 %v397_v1, %v396_v56  ;;  %v421_v15 = vrot.slane %v420_v2, 2  ;;  %v444_v16 = vadd.f32 %v443_v3, %v441_v62  ;;  %vm1238_vm6 = vmand %vm487_vm11, %vm238_vm9 }
  0x6b   : > { %v387_v19 = vrot.slane %v386_v4, 1  ;;  %v410_v20 = vadd.f32 %v409_v6, %v408_v60  ;;  %v433_v5 = vrot.slane %v432_v7, 2  ;;  %v455_v21 = vrot.slane %v453_v8, 4  ;;  %vm1251_vm7 = vmand %vm499_vm13, %vm238_vm9  ;;  %v454_v60 = vld [vmem:[%s1095_s5 + $0x7] sm:$0x1] }
  0x6c   : > { %v376_v22 = vadd.f32 %v375_v11, %v374_v63  ;;  %v399_v24 = vrot.slane %v398_v12, 1  ;;  %v422_v25 = vadd.f32 %v421_v15, %v420_v2  ;;  %v445_v26 = vrot.slane %v444_v16, 2  ;;  %vm1261_vm8 = vmand %vm511_vm15, %vm238_vm9 }
  0x6d   : > { %v388_v27 = vadd.f32 %v387_v19, %v386_v4  ;;  %v411_v29 = vrot.slane %v410_v20, 1  ;;  %v434_v9 = vadd.f32 %v433_v5, %v432_v7  ;;  %v456_v30 = vadd.f32 %v455_v21, %v453_v8  ;;  %vm1277_vm11 = vmand %vm523_vm1, %vm238_vm9 }
  0x6e   : > { %v377_v32 = vadd.f32 %v376_v22, %v370_v18  ;;  %v400_v33 = vadd.f32 %v399_v24, %v398_v12  ;;  %v423_v35 = vrot.slane %v422_v25, 1  ;;  %v446_v36 = vadd.f32 %v445_v26, %v444_v16  ;;  %vm536_vm12 = vmand %vm535_vm2, %vm238_vm9 }
  0x6f   : > { %v389_v38 = vadd.f32 %v388_v27, %v382_v23  ;;  %v412_v17 = vadd.f32 %v411_v29, %v410_v20  ;;  %v435_v40 = vrot.slane %v434_v9, 1  ;;  %v457_v42 = vrot.slane %v456_v30, 2  ;;  %vm548_vm13 = vmand %vm547_vm3, %vm238_vm9 }
  0x70   : > { %378 = vst [vmem:[%s1095_s5] sm:$0x1] %v377_v32  ;;  %v401_v44 = vadd.f32 %v400_v33, %v394_v28  ;;  %v424_v45 = vadd.f32 %v423_v35, %v422_v25  ;;  %v447_v14 = vrot.slane %v446_v36, 1  ;;  %v465_v46 = vsel %vm1220_vm4, 1.0, %v998_v0 }
  0x71   : > { %390 = vst [vmem:[%s1095_s5 + $0x1] sm:$0x1] %v389_v38  ;;  %v413_v48 = vadd.f32 %v412_v17, %v406_v34  ;;  %v436_v49 = vadd.f32 %v435_v40, %v434_v9  ;;  %v458_v51 = vadd.f32 %v457_v42, %v456_v30  ;;  %v467_v52 = vrot.slane %v465_v46, 4  ;;  %v466_v9 = vld [vmem:[%s1095_s5 + $0x8] sm:$0x1] }
  0x72   : > { %vm559_vm10 = vcmp.eq.f32.partialorder %v1163_v10, 16.0  ;;  %402 = vst [vmem:[%s1095_s5 + $0x2] sm:$0x1] %v401_v44  ;;  %v425_v54 = vadd.f32 %v424_v45, %v418_v39  ;;  %v448_v55 = vadd.f32 %v447_v14, %v446_v36  ;;  %v477_v56 = vsel %vm1229_vm5, 1.0, %v998_v0  ;;  %v478_v38 = vld [vmem:[%s1095_s5 + $0x9] sm:$0x1] }
  0x73   : > { %v489_v57 = vsel %vm1238_vm6, 1.0, %v998_v0  ;;  %414 = vst [vmem:[%s1095_s5 + $0x3] sm:$0x1] %v413_v48  ;;  %v437_v59 = vadd.f32 %v436_v49, %v430_v13  ;;  %v459_v61 = vrot.slane %v458_v51, 1  ;;  %v468_v62 = vadd.f32 %v467_v52, %v465_v46  ;;  %vm1312_vm14 = vmand %vm559_vm10, %vm238_vm9  ;;  %v490_v13 = vld [vmem:[%s1095_s5 + $0xa] sm:$0x1] }
  0x74   : > { %v479_v63 = vrot.slane %v477_v56, 4  ;;  %426 = vst [vmem:[%s1095_s5 + $0x4] sm:$0x1] %v425_v54  ;;  %v449_v1 = vadd.f32 %v448_v55, %v442_v50  ;;  %v491_v2 = vrot.slane %v489_v57, 4  ;;  %v501_v3 = vsel %vm1251_vm7, 1.0, %v998_v0 }
  0x75   : > { %v513_v4 = vsel %vm1261_vm8, 1.0, %v998_v0  ;;  %438 = vst [vmem:[%s1095_s5 + $0x5] sm:$0x1] %v437_v59  ;;  %v460_v6 = vadd.f32 %v459_v61, %v458_v51  ;;  %v469_v7 = vrot.slane %v468_v62, 2  ;;  %v503_v11 = vrot.slane %v501_v3, 4 }
  0x76   : > { %v480_v8 = vadd.f32 %v479_v63, %v477_v56  ;;  %450 = vst [vmem:[%s1095_s5 + $0x6] sm:$0x1] %v449_v1  ;;  %v492_v12 = vadd.f32 %v491_v2, %v489_v57  ;;  %v515_v15 = vrot.slane %v513_v4, 4  ;;  %v525_v16 = vsel %vm1277_vm11, 1.0, %v998_v0  ;;  %v502_v48 = vld [vmem:[%s1095_s5 + $0xb] sm:$0x1] }
  0x77   : > { %v537_v18 = vsel %vm536_vm12, 1.0, %v998_v0  ;;  %v461_v19 = vadd.f32 %v460_v6, %v454_v60  ;;  %v470_v20 = vadd.f32 %v469_v7, %v468_v62  ;;  %v504_v21 = vadd.f32 %v503_v11, %v501_v3  ;;  %v514_v54 = vld [vmem:[%s1095_s5 + $0xc] sm:$0x1]  ;;  %v526_v59 = vld [vmem:[%s1095_s5 + $0xd] sm:$0x1] }
  0x78   : > { %v481_v5 = vrot.slane %v480_v8, 2  ;;  %v493_v22 = vrot.slane %v492_v12, 2  ;;  %v516_v23 = vadd.f32 %v515_v15, %v513_v4  ;;  %v527_v24 = vrot.slane %v525_v16, 4  ;;  %v538_v63 = vld [vmem:[%s1095_s5 + $0xe] sm:$0x1] }
  0x79   : > { %v539_v25 = vrot.slane %v537_v18, 4  ;;  %462 = vst [vmem:[%s1095_s5 + $0x7] sm:$0x1] %v461_v19  ;;  %v471_v26 = vrot.slane %v470_v20, 1  ;;  %v505_v28 = vrot.slane %v504_v21, 2  ;;  %v549_v29 = vsel %vm548_vm13, 1.0, %v998_v0 }
  0x7a   : > { %v482_v27 = vadd.f32 %v481_v5, %v480_v8  ;;  %v494_v30 = vadd.f32 %v493_v22, %v492_v12  ;;  %v517_v31 = vrot.slane %v516_v23, 2  ;;  %v528_v32 = vadd.f32 %v527_v24, %v525_v16  ;;  %v550_v16 = vld [vmem:[%s1095_s5 + $0xf] sm:$0x1] }
  0x7b   : > { %v540_v33 = vadd.f32 %v539_v25, %v537_v18  ;;  %v472_v34 = vadd.f32 %v471_v26, %v470_v20  ;;  %v506_v36 = vadd.f32 %v505_v28, %v504_v21  ;;  %v551_v37 = vrot.slane %v549_v29, 4 }
  0x7c   : > { %v483_v35 = vrot.slane %v482_v27, 1  ;;  %v495_v17 = vrot.slane %v494_v30, 1  ;;  %v518_v39 = vadd.f32 %v517_v31, %v516_v23  ;;  %v529_v40 = vrot.slane %v528_v32, 2 }
  0x7d   : > { %v541_v42 = vrot.slane %v540_v33, 2  ;;  %v473_v44 = vadd.f32 %v472_v34, %v466_v9  ;;  %v507_v14 = vrot.slane %v506_v36, 1  ;;  %v552_v46 = vadd.f32 %v551_v37, %v549_v29  ;;  %v562_v34 = vld [vmem:[%s1095_s5 + $0x10] sm:$0x1] }
  0x7e   : > { %v484_v45 = vadd.f32 %v483_v35, %v482_v27  ;;  %v496_v47 = vadd.f32 %v495_v17, %v494_v30  ;;  %v519_v49 = vrot.slane %v518_v39, 1  ;;  %v530_v50 = vadd.f32 %v529_v40, %v528_v32 }
  0x7f   : > { %v542_v51 = vadd.f32 %v541_v42, %v540_v33  ;;  %474 = vst [vmem:[%s1095_s5 + $0x8] sm:$0x1] %v473_v44  ;;  %v508_v53 = vadd.f32 %v507_v14, %v506_v36  ;;  %v553_v55 = vrot.slane %v552_v46, 2  ;;  %v561_v56 = vsel %vm1312_vm14, 1.0, %v998_v0 }
  0x80   : > { %v485_v52 = vadd.f32 %v484_v45, %v478_v38  ;;  %v497_v57 = vadd.f32 %v496_v47, %v490_v13  ;;  %v520_v58 = vadd.f32 %v519_v49, %v518_v39  ;;  %v531_v60 = vrot.slane %v530_v50, 1 }
  0x81   : > { %v543_v61 = vrot.slane %v542_v51, 1  ;;  %v509_v62 = vadd.f32 %v508_v53, %v502_v48  ;;  %v554_v1 = vadd.f32 %v553_v55, %v552_v46  ;;  %v563_v2 = vrot.slane %v561_v56, 4  ;;  %v574_v46 = vld [vmem:[%s1095_s5 + $0x11] sm:$0x1] }
  0x82   : > { %486 = vst [vmem:[%s1095_s5 + $0x9] sm:$0x1] %v485_v52  ;;  %vm571_vm15 = vcmp.eq.f32.partialorder %v1163_v10, 17.0  ;;  %v521_v3 = vadd.f32 %v520_v58, %v514_v54  ;;  %v532_v4 = vadd.f32 %v531_v60, %v530_v50  ;;  %vm583_vm1 = vcmp.eq.f32.partialorder %v1163_v10, 18.0 }
  0x83   : > { %498 = vst [vmem:[%s1095_s5 + $0xa] sm:$0x1] %v497_v57  ;;  %v544_v6 = vadd.f32 %v543_v61, %v542_v51  ;;  %vm572_vm0 = vmand %vm571_vm15, %vm238_vm9  ;;  %v555_v7 = vrot.slane %v554_v1, 1  ;;  %v564_v8 = vadd.f32 %v563_v2, %v561_v56  ;;  %vm595_vm3 = vcmp.eq.f32.partialorder %v1163_v10, 19.0  ;;  %v586_v51 = vld [vmem:[%s1095_s5 + $0x12] sm:$0x1] }
  0x84   : > { %510 = vst [vmem:[%s1095_s5 + $0xb] sm:$0x1] %v509_v62  ;;  %v573_v11 = vsel %vm572_vm0, 1.0, %v998_v0  ;;  %vm584_vm2 = vmand %vm583_vm1, %vm238_vm9  ;;  %v533_v12 = vadd.f32 %v532_v4, %v526_v59  ;;  %vm607_vm5 = vcmp.eq.f32.partialorder %v1163_v10, 20.0  ;;  %vm619_vm6 = vcmp.eq.f32.partialorder %v1163_v10, 21.0 }
  0x85   : > { %522 = vst [vmem:[%s1095_s5 + $0xc] sm:$0x1] %v521_v3  ;;  %v545_v15 = vadd.f32 %v544_v6, %v538_v63  ;;  %v575_v18 = vrot.slane %v573_v11, 4  ;;  %v585_v19 = vsel %vm584_vm2, 1.0, %v998_v0  ;;  %vm596_vm4 = vmand %vm595_vm3, %vm238_vm9  ;;  %v556_v20 = vadd.f32 %v555_v7, %v554_v1  ;;  %v598_v56 = vld [vmem:[%s1095_s5 + $0x13] sm:$0x1] }
  0x86   : > { %v565_v5 = vrot.slane %v564_v8, 2  ;;  %v587_v21 = vrot.slane %v585_v19, 4  ;;  %v597_v22 = vsel %vm596_vm4, 1.0, %v998_v0  ;;  %534 = vst [vmem:[%s1095_s5 + $0xd] sm:$0x1] %v533_v12  ;;  %vm608_vm7 = vmand %vm607_vm5, %vm238_vm9  ;;  %vm631_vm8 = vcmp.eq.f32.partialorder %v1163_v10, 22.0 }
  0x87   : > { %v576_v23 = vadd.f32 %v575_v18, %v573_v11  ;;  %v599_v24 = vrot.slane %v597_v22, 4  ;;  %546 = vst [vmem:[%s1095_s5 + $0xe] sm:$0x1] %v545_v15  ;;  %v557_v25 = vadd.f32 %v556_v20, %v550_v16  ;;  %v609_v9 = vsel %vm608_vm7, 1.0, %v998_v0  ;;  %vm620_vm10 = vmand %vm619_vm6, %vm238_vm9  ;;  %v610_v1 = vld [vmem:[%s1095_s5 + $0x14] sm:$0x1] }
  0x88   : > { %v566_v26 = vadd.f32 %v565_v5, %v564_v8  ;;  %v588_v27 = vadd.f32 %v587_v21, %v585_v19  ;;  %vm643_vm11 = vcmp.eq.f32.partialorder %v1163_v10, 23.0  ;;  %v611_v32 = vrot.slane %v609_v9, 4  ;;  %vm632_vm12 = vmand %vm631_vm8, %vm238_vm9  ;;  %v622_v3 = vld [vmem:[%s1095_s5 + $0x15] sm:$0x1]  ;;  %v634_v19 = vld [vmem:[%s1095_s5 + $0x16] sm:$0x1] }
  0x89   : > { %v577_v28 = vrot.slane %v576_v23, 2  ;;  %v600_v29 = vadd.f32 %v599_v24, %v597_v22  ;;  %558 = vst [vmem:[%s1095_s5 + $0xf] sm:$0x1] %v557_v25  ;;  %v621_v33 = vsel %vm620_vm10, 1.0, %v998_v0  ;;  %v633_v38 = vsel %vm632_vm12, 1.0, %v998_v0  ;;  %vm644_vm13 = vmand %vm643_vm11, %vm238_vm9 }
  0x8a   : > { %v567_v30 = vrot.slane %v566_v26, 1  ;;  %v589_v31 = vrot.slane %v588_v27, 2  ;;  %v623_v37 = vrot.slane %v621_v33, 4  ;;  %v612_v40 = vadd.f32 %v611_v32, %v609_v9 }
  0x8b   : > { %v578_v35 = vadd.f32 %v577_v28, %v576_v23  ;;  %v601_v36 = vrot.slane %v600_v29, 2  ;;  %v635_v42 = vrot.slane %v633_v38, 4  ;;  %v645_v13 = vsel %vm644_vm13, 1.0, %v998_v0  ;;  %v646_v28 = vld [vmem:[%s1095_s5 + $0x17] sm:$0x1] }
  0x8c   : > { %v568_v17 = vadd.f32 %v567_v30, %v566_v26  ;;  %v590_v39 = vadd.f32 %v589_v31, %v588_v27  ;;  %v624_v45 = vadd.f32 %v623_v37, %v621_v33  ;;  %v613_v48 = vrot.slane %v612_v40, 2 }
  0x8d   : > { %v579_v43 = vrot.slane %v578_v35, 1  ;;  %v602_v44 = vadd.f32 %v601_v36, %v600_v29  ;;  %v636_v49 = vadd.f32 %v635_v42, %v633_v38  ;;  %v647_v54 = vrot.slane %v645_v13, 4  ;;  %v658_v36 = vld [vmem:[%s1095_s5 + $0x18] sm:$0x1]  ;;  %v670_v42 = vld [vmem:[%s1095_s5 + $0x19] sm:$0x1] }
  0x8e   : > { %v569_v14 = vadd.f32 %v568_v17, %v562_v34  ;;  %v591_v47 = vrot.slane %v590_v39, 1  ;;  %v625_v53 = vrot.slane %v624_v45, 2  ;;  %v614_v57 = vadd.f32 %v613_v48, %v612_v40 }
  0x8f   : > { %v580_v50 = vadd.f32 %v579_v43, %v578_v35  ;;  %v603_v52 = vrot.slane %v602_v44, 1  ;;  %v637_v58 = vrot.slane %v636_v49, 2  ;;  %vm655_vm14 = vcmp.eq.f32.partialorder %v1163_v10, 24.0 }
  0x90   : > { %570 = vst [vmem:[%s1095_s5 + $0x10] sm:$0x1] %v569_v14  ;;  %v592_v55 = vadd.f32 %v591_v47, %v590_v39  ;;  %v626_v61 = vadd.f32 %v625_v53, %v624_v45  ;;  %v648_v62 = vadd.f32 %v647_v54, %v645_v13  ;;  %vm656_vm15 = vmand %vm655_vm14, %vm238_vm9  ;;  %v615_v2 = vrot.slane %v614_v57, 1  ;;  %v682_v45 = vld [vmem:[%s1095_s5 + $0x1a] sm:$0x1] }
  0x91   : > { %v581_v59 = vadd.f32 %v580_v50, %v574_v46  ;;  %v604_v60 = vadd.f32 %v603_v52, %v602_v44  ;;  %v638_v4 = vadd.f32 %v637_v58, %v636_v49  ;;  %v657_v6 = vsel %vm656_vm15, 1.0, %v998_v0 }
  0x92   : > { %v593_v63 = vadd.f32 %v592_v55, %v586_v51  ;;  %v627_v8 = vrot.slane %v626_v61, 1  ;;  %v649_v11 = vrot.slane %v648_v62, 2  ;;  %v659_v12 = vrot.slane %v657_v6, 4 }
  0x93   : > { %582 = vst [vmem:[%s1095_s5 + $0x11] sm:$0x1] %v581_v59  ;;  %v605_v7 = vadd.f32 %v604_v60, %v598_v56  ;;  %v616_v15 = vadd.f32 %v615_v2, %v614_v57  ;;  %v639_v16 = vrot.slane %v638_v4, 1  ;;  %vm667_vm0 = vcmp.eq.f32.partialorder %v1163_v10, 25.0 }
  0x94   : > { %594 = vst [vmem:[%s1095_s5 + $0x12] sm:$0x1] %v593_v63  ;;  %vm679_vm1 = vcmp.eq.f32.partialorder %v1163_v10, 26.0  ;;  %v628_v18 = vadd.f32 %v627_v8, %v626_v61  ;;  %v650_v20 = vadd.f32 %v649_v11, %v648_v62  ;;  %v660_v5 = vadd.f32 %v659_v12, %v657_v6  ;;  %vm668_vm2 = vmand %vm667_vm0, %vm238_vm9 }
  0x95   : > { %606 = vst [vmem:[%s1095_s5 + $0x13] sm:$0x1] %v605_v7  ;;  %v617_v21 = vadd.f32 %v616_v15, %v610_v1  ;;  %v640_v22 = vadd.f32 %v639_v16, %v638_v4  ;;  %v669_v23 = vsel %vm668_vm2, 1.0, %v998_v0  ;;  %vm680_vm3 = vmand %vm679_vm1, %vm238_vm9 }
  0x96   : > { %v629_v24 = vadd.f32 %v628_v18, %v622_v3  ;;  %v651_v10 = vrot.slane %v650_v20, 1  ;;  %v661_v25 = vrot.slane %v660_v5, 2  ;;  %v671_v26 = vrot.slane %v669_v23, 4 }
  0x97   : > { %618 = vst [vmem:[%s1095_s5 + $0x14] sm:$0x1] %v617_v21  ;;  %v641_v27 = vadd.f32 %v640_v22, %v634_v19  ;;  %v681_v29 = vsel %vm680_vm3, 1.0, %v998_v0 }
  0x98   : > { %630 = vst [vmem:[%s1095_s5 + $0x15] sm:$0x1] %v629_v24  ;;  %v652_v9 = vadd.f32 %v651_v10, %v650_v20  ;;  %v662_v30 = vadd.f32 %v661_v25, %v660_v5  ;;  %v672_v31 = vadd.f32 %v671_v26, %v669_v23  ;;  %v683_v32 = vrot.slane %v681_v29, 4 }
  0x99   : > { %642 = vst [vmem:[%s1095_s5 + $0x16] sm:$0x1] %v641_v27 }
  0x9a   : > { %v653_v41 = vadd.f32 %v652_v9, %v646_v28  ;;  %v663_v33 = vrot.slane %v662_v30, 1  ;;  %v673_v34 = vrot.slane %v672_v31, 2  ;;  %v684_v35 = vadd.f32 %v683_v32, %v681_v29 }
  0x9c   : > { %654 = vst [vmem:[%s1095_s5 + $0x17] sm:$0x1] %v653_v41  ;;  %v664_v37 = vadd.f32 %v663_v33, %v662_v30  ;;  %v674_v38 = vadd.f32 %v673_v34, %v672_v31  ;;  %v685_v0 = vrot.slane %v684_v35, 2 }
  0x9e   : > { %v665_v17 = vadd.f32 %v664_v37, %v658_v36  ;;  %v675_v39 = vrot.slane %v674_v38, 1  ;;  %v686_v40 = vadd.f32 %v685_v0, %v684_v35 }
  0xa0   : > { %666 = vst [vmem:[%s1095_s5 + $0x18] sm:$0x1] %v665_v17  ;;  %v676_v43 = vadd.f32 %v675_v39, %v674_v38  ;;  %v687_v44 = vrot.slane %v686_v40, 1 }
  0xa2   : > { %v677_v13 = vadd.f32 %v676_v43, %v670_v42  ;;  %v688_v14 = vadd.f32 %v687_v44, %v686_v40 }
  0xa4   : > { %678 = vst [vmem:[%s1095_s5 + $0x19] sm:$0x1] %v677_v13  ;;  %v689_v46 = vadd.f32 %v688_v14, %v682_v45 }
  0xa6   : > { %690 = vst [vmem:[%s1095_s5 + $0x1a] sm:$0x1] %v689_v46 }
  0xa7 PF: > { %s18_s14 = sadd.s32 1, %s993_s14   ;;  %s1432_s9 = smov %s977_s10 }
  0xa8   : > { %p15_p0 = scmp.ge.s32.totalorder %s18_s14, 4   ;;  %s1433_s10 = smov %s981_s11 }
  0xa9   : > { %s1434_s11 = smov %s1059_s20  ;;  %s1435_s12 = smov %s989_s13 }
  0xaa   : > { %s1436_s13 = smov %s1438_s16  ;;  %17 = sbr.rel (!%p15_p0) target bundleno = 6 (0x6), region = 87 }
  0xaf   :  { %712 = vsyncpa [#allocation3], 1 }
  0xb0   :  { %714 = vsyncpa [#allocation3 + $0x1], 1 }
  0xb1   :  { %715 = vsyncpa [#allocation5], 1 }
  0xb2   :  { %717 = vsyncpa [#allocation5 + $0x1], 1 }

</bundles_post_ra>
